<compile_context>
chip_gen: v7x
topology: tpu7x:2x2x1
jax: 0.10.0
libtpu: 0.0.40
codegen_flags: <defaults>
</compile_context>

<pallas_src>
import jax
import jax.numpy as jnp
from jax import lax
from jax.experimental import pallas as pl
from jax.experimental.pallas import tpu as pltpu

_EPS = 1e-5          # nn.BatchNorm2d default eps
_NEG_SLOPE = 0.1     # nn.LeakyReLU(0.1)
_C1 = 32             # conv1 out channels
_C2 = 16             # conv2 out channels


def _leaky(v):
    return jnp.where(v > 0, v, _NEG_SLOPE * v)


# --------------------------- fused Pallas kernel -----------------------------

def _make_fused_kernel(H, W):
    Hc1, Wc1 = H - 2, W - 2        # conv1 output (valid 3x3)
    Hp1, Wp1 = Hc1 // 2, Wc1 // 2  # after MaxPool(2,2)
    Hc2, Wc2 = Hp1 - 2, Wp1 - 2    # conv2 output (valid 3x3)
    Hp2 = Hc2 // 2                 # after MaxPool(2,1)
    inv_n = 1.0 / float(Hp2 * Wc2)

    def kernel(xe_ref, xo_ref, w1_ref, b1_ref, w2_ref, b2_ref, o_ref):
        xe = xe_ref[0]             # [H, W//2, 1]  even image columns (w = 0,2,..)
        xo = xo_ref[0]             # [H, W//2, 1]  odd  image columns (w = 1,3,..)

        # ---- Conv1(1->32, 3x3) + folded BN + LeakyReLU -----------------------
        # 9 shifted VPU FMAs; outputs kept split by column parity so the 2x2
        # max-pool needs only element-wise max (no strided slicing).
        acc_e = jnp.zeros((Hc1, Wp1, _C1), jnp.float32)   # output cols 0,2,4,..
        acc_o = jnp.zeros((Hc1, Wp1, _C1), jnp.float32)   # output cols 1,3,5,..
        for dy in range(3):
            for dx in range(3):
                wk = w1_ref[dy * 3 + dx]                  # [1, 1, C1]
                if dx == 0:
                    se = xe[dy:dy + Hc1, 0:Wp1, :]
                    so = xo[dy:dy + Hc1, 0:Wp1, :]
                elif dx == 1:
                    se = xo[dy:dy + Hc1, 0:Wp1, :]
                    so = xe[dy:dy + Hc1, 1:Wp1 + 1, :]
                else:
                    se = xe[dy:dy + Hc1, 1:Wp1 + 1, :]
                    so = xo[dy:dy + Hc1, 1:Wp1 + 1, :]
                acc_e = acc_e + se * wk                   # [Hc1,Wp1,1]*[1,1,C1]
                acc_o = acc_o + so * wk
        b1 = b1_ref[...]                                  # [1, 1, C1]
        y1e = _leaky(acc_e + b1)
        y1o = _leaky(acc_o + b1)

        # ---- MaxPool(2,2): column pairs = parity max, row pairs = static idx.
        pw = jnp.maximum(y1e, y1o)                        # [Hc1, Wp1, C1]
        p1 = [jnp.maximum(pw[2 * i], pw[2 * i + 1]) for i in range(Hp1)]  # [Wp1,C1] each

        # ---- Conv2(32->16, 3x3) + folded BN + LeakyReLU: MXU matmuls ---------
        b2 = b2_ref[...]                                  # [1, C2]
        y2 = []
        for h in range(Hc2):
            z = jnp.zeros((Wc2, _C2), jnp.float32) + b2
            for dy in range(3):
                row = p1[h + dy]                          # [Wp1, C1]
                for dx in range(3):
                    z = z + jnp.dot(row[dx:dx + Wc2, :],  # [Wc2, C1]
                                    w2_ref[dy * 3 + dx],  # [C1, C2]
                                    preferred_element_type=jnp.float32)
            y2.append(_leaky(z))                          # [Wc2, C2]

        # ---- MaxPool(2,1) + global spatial mean -> [1, C2] -------------------
        tot = jnp.zeros((1, _C2), jnp.float32)
        for j in range(Hp2):
            m = jnp.maximum(y2[2 * j], y2[2 * j + 1])     # [Wc2, C2]
            tot = tot + jnp.sum(m, axis=0, keepdims=True)
        o_ref[0] = tot * inv_n

    return kernel


# ------------------------------ wrapper (plain JAX) ---------------------------

def _fold_bn(w_oihw, b_conv, gamma, beta, mean, var):
    # eval-mode BN folded into conv: y = conv(x)*s + ((b - mean)*s + beta)
    scale = gamma / jnp.sqrt(var + _EPS)
    cout, cin, kh, kw = w_oihw.shape
    # [Cout,Cin,kh,kw] -> [(dy*kw+dx)*Cin + ci, Cout]
    w_mat = jnp.transpose(w_oihw, (2, 3, 1, 0)).reshape(kh * kw * cin, cout)
    return w_mat * scale[None, :], (b_conv - mean) * scale + beta


def feature_extractor_forward(x_nchw, params):
    x = jnp.transpose(x_nchw, (0, 2, 3, 1)).astype(jnp.float32)   # NCHW -> NHWC
    B, H, W, _ = x.shape
    assert H % 2 == 0 and W % 2 == 0, "even spatial dims expected"

    w1m, b1v = _fold_bn(params['w1'], params['b1'], params['g1'], params['be1'],
                        params['m1'], params['v1'])
    w2m, b2v = _fold_bn(params['w2'], params['b2'], params['g2'], params['be2'],
                        params['m2'], params['v2'])
    w1k = w1m.reshape(9, 1, 1, _C1)          # per-tap broadcast weights
    b1k = b1v.reshape(1, 1, _C1)
    w2k = w2m.reshape(9, _C1, _C2)           # per-tap [32,16] matmul weights
    b2k = b2v.reshape(1, _C2)

    xe = x[:, :, 0::2, :]                    # [B, H, W//2, 1]
    xo = x[:, :, 1::2, :]

    out = pl.pallas_call(
        _make_fused_kernel(H, W),
        out_shape=jax.ShapeDtypeStruct((B, 1, _C2), jnp.float32),
        grid_spec=pltpu.PrefetchScalarGridSpec(
            num_scalar_prefetch=0,
            grid=(B,),
            in_specs=[
                pl.BlockSpec((1, H, W // 2, 1), lambda b: (b, 0, 0, 0)),
                pl.BlockSpec((1, H, W // 2, 1), lambda b: (b, 0, 0, 0)),
                pl.BlockSpec((9, 1, 1, _C1), lambda b: (0, 0, 0, 0)),
                pl.BlockSpec((1, 1, _C1), lambda b: (0, 0, 0)),
                pl.BlockSpec((9, _C1, _C2), lambda b: (0, 0, 0)),
                pl.BlockSpec((1, _C2), lambda b: (0, 0)),
            ],
            out_specs=pl.BlockSpec((1, 1, _C2), lambda b: (b, 0, 0)),
        ),
        compiler_params=pltpu.CompilerParams(
            dimension_semantics=("parallel",)),
    )(xe, xo, w1k, b1k, w2k, b2k)
    return out.reshape(B, _C2)


# ------------------------------ pure-JAX reference ----------------------------

def _reference(x_nchw, p):
    def bn(y, g, be, m, v):
        return ((y - m[None, :, None, None]) / jnp.sqrt(v + _EPS)[None, :, None, None]
                * g[None, :, None, None] + be[None, :, None, None])

    def lrelu(y):
        return jnp.where(y > 0, y, _NEG_SLOPE * y)

    dn = ('NCHW', 'OIHW', 'NCHW')
    y = lax.conv_general_dilated(x_nchw, p['w1'], (1, 1), 'VALID',
                                 dimension_numbers=dn,
                                 precision=lax.Precision.HIGHEST)
    y = y + p['b1'][None, :, None, None]
    y = lrelu(bn(y, p['g1'], p['be1'], p['m1'], p['v1']))
    y = lax.reduce_window(y, -jnp.inf, lax.max, (1, 1, 2, 2), (1, 1, 2, 2), 'VALID')
    y = lax.conv_general_dilated(y, p['w2'], (1, 1), 'VALID',
                                 dimension_numbers=dn,
                                 precision=lax.Precision.HIGHEST)
    y = y + p['b2'][None, :, None, None]
    y = lrelu(bn(y, p['g2'], p['be2'], p['m2'], p['v2']))
    y = lax.reduce_window(y, -jnp.inf, lax.max, (1, 1, 2, 1), (1, 1, 2, 1), 'VALID')
    return y.mean(axis=(2, 3))


# ----------------------------------- main -------------------------------------

if __name__ == "__main__":
    kx, kp = jax.random.split(jax.random.PRNGKey(0))
    # MNIST-like single-channel input at small spatial size
    x = jax.random.normal(kx, (2, 1, 16, 16), dtype=jnp.float32)

    ks = jax.random.split(kp, 12)
    params = dict(
        w1=0.1 * jax.random.normal(ks[0], (32, 1, 3, 3), dtype=jnp.float32),
        b1=0.05 * jax.random.normal(ks[1], (32,), dtype=jnp.float32),
        g1=1.0 + 0.1 * jax.random.normal(ks[2], (32,), dtype=jnp.float32),
        be1=0.05 * jax.random.normal(ks[3], (32,), dtype=jnp.float32),
        m1=0.1 * jax.random.normal(ks[4], (32,), dtype=jnp.float32),
        v1=jax.random.uniform(ks[5], (32,), dtype=jnp.float32, minval=0.5, maxval=1.5),
        w2=0.1 * jax.random.normal(ks[6], (16, 32, 3, 3), dtype=jnp.float32),
        b2=0.05 * jax.random.normal(ks[7], (16,), dtype=jnp.float32),
        g2=1.0 + 0.1 * jax.random.normal(ks[8], (16,), dtype=jnp.float32),
        be2=0.05 * jax.random.normal(ks[9], (16,), dtype=jnp.float32),
        m2=0.1 * jax.random.normal(ks[10], (16,), dtype=jnp.float32),
        v2=jax.random.uniform(ks[11], (16,), dtype=jnp.float32, minval=0.5, maxval=1.5),
    )

    fwd = jax.jit(feature_extractor_forward)
    feats = jax.block_until_ready(fwd(x, params))
    assert feats.shape == (2, 16) and feats.dtype == jnp.float32

    ref = _reference(x, params)
    max_err = float(jnp.max(jnp.abs(feats - ref)))
    assert jnp.allclose(feats, ref, atol=1e-3, rtol=1e-3), f"max_err={max_err}"

    print("KERNEL_OK")
</pallas_src>

<mosaic_0001>
module attributes {stable_mosaic.version = 11 : i64} {
  func.func @kernel(%arg0: i32, %arg1: memref<1x16x8x1xf32, #tpu.memory_space<vmem>>, %arg2: memref<1x16x8x1xf32, #tpu.memory_space<vmem>>, %arg3: memref<9x1x1x32xf32, #tpu.memory_space<vmem>>, %arg4: memref<1x1x32xf32, #tpu.memory_space<vmem>>, %arg5: memref<9x32x16xf32, #tpu.memory_space<vmem>>, %arg6: memref<1x16xf32, #tpu.memory_space<vmem>>, %arg7: memref<1x1x16xf32, #tpu.memory_space<vmem>>) attributes {dimension_semantics = [#tpu.dimension_semantics<parallel>], iteration_bounds = array<i64: 2>, scalar_prefetch = 0 : i64, scratch_operands = 0 : i64, tpu.core_type = #tpu.core_type<tc>, window_params = [{transform_indices = @transform_0, window_bounds = array<i64: 1, 16, 8, 1>}, {transform_indices = @transform_1, window_bounds = array<i64: 1, 16, 8, 1>}, {pipeline_mode = #tpu.pipeline_mode<synchronous>, transform_indices = @transform_2, window_bounds = array<i64: 9, 1, 1, 32>}, {pipeline_mode = #tpu.pipeline_mode<synchronous>, transform_indices = @transform_3, window_bounds = array<i64: 1, 1, 32>}, {pipeline_mode = #tpu.pipeline_mode<synchronous>, transform_indices = @transform_4, window_bounds = array<i64: 9, 32, 16>}, {pipeline_mode = #tpu.pipeline_mode<synchronous>, transform_indices = @transform_5, window_bounds = array<i64: 1, 16>}, {transform_indices = @transform_6, window_bounds = array<i64: 1, 1, 16>}]} {
    %c0 = arith.constant 0 : index
    %c0_0 = arith.constant 0 : index
    %c0_1 = arith.constant 0 : index
    %c0_2 = arith.constant 0 : index
    %0 = vector.load %arg1[%c0, %c0_0, %c0_1, %c0_2] : memref<1x16x8x1xf32, #tpu.memory_space<vmem>>, vector<1x16x8x1xf32>
    %1 = vector.shape_cast %0 : vector<1x16x8x1xf32> to vector<16x8x1xf32>
    %c0_3 = arith.constant 0 : index
    %c0_4 = arith.constant 0 : index
    %c0_5 = arith.constant 0 : index
    %c0_6 = arith.constant 0 : index
    %2 = vector.load %arg2[%c0_3, %c0_4, %c0_5, %c0_6] : memref<1x16x8x1xf32, #tpu.memory_space<vmem>>, vector<1x16x8x1xf32>
    %3 = vector.shape_cast %2 : vector<1x16x8x1xf32> to vector<16x8x1xf32>
    %cst = arith.constant 0.000000e+00 : f32
    %4 = vector.broadcast %cst : f32 to vector<14x7x32xf32>
    %cst_7 = arith.constant 0.000000e+00 : f32
    %5 = vector.broadcast %cst_7 : f32 to vector<14x7x32xf32>
    %c0_8 = arith.constant 0 : index
    %c0_9 = arith.constant 0 : index
    %c0_10 = arith.constant 0 : index
    %c0_11 = arith.constant 0 : index
    %6 = vector.load %arg3[%c0_8, %c0_9, %c0_10, %c0_11] : memref<9x1x1x32xf32, #tpu.memory_space<vmem>>, vector<1x1x1x32xf32>
    %7 = vector.shape_cast %6 : vector<1x1x1x32xf32> to vector<1x1x32xf32>
    %8 = vector.extract_strided_slice %1 {offsets = [0, 0, 0], sizes = [14, 7, 1], strides = [1, 1, 1]} : vector<16x8x1xf32> to vector<14x7x1xf32>
    %9 = vector.extract_strided_slice %3 {offsets = [0, 0, 0], sizes = [14, 7, 1], strides = [1, 1, 1]} : vector<16x8x1xf32> to vector<14x7x1xf32>
    %10 = vector.broadcast %8 : vector<14x7x1xf32> to vector<14x7x32xf32>
    %11 = vector.broadcast %7 : vector<1x1x32xf32> to vector<14x7x32xf32>
    %12 = arith.mulf %10, %11 : vector<14x7x32xf32>
    %13 = arith.addf %4, %12 : vector<14x7x32xf32>
    %14 = vector.broadcast %9 : vector<14x7x1xf32> to vector<14x7x32xf32>
    %15 = vector.broadcast %7 : vector<1x1x32xf32> to vector<14x7x32xf32>
    %16 = arith.mulf %14, %15 : vector<14x7x32xf32>
    %17 = arith.addf %5, %16 : vector<14x7x32xf32>
    %c1 = arith.constant 1 : index
    %c0_12 = arith.constant 0 : index
    %c0_13 = arith.constant 0 : index
    %c0_14 = arith.constant 0 : index
    %18 = vector.load %arg3[%c1, %c0_12, %c0_13, %c0_14] : memref<9x1x1x32xf32, #tpu.memory_space<vmem>>, vector<1x1x1x32xf32>
    %19 = vector.shape_cast %18 : vector<1x1x1x32xf32> to vector<1x1x32xf32>
    %20 = vector.extract_strided_slice %3 {offsets = [0, 0, 0], sizes = [14, 7, 1], strides = [1, 1, 1]} : vector<16x8x1xf32> to vector<14x7x1xf32>
    %21 = vector.extract_strided_slice %1 {offsets = [0, 1, 0], sizes = [14, 7, 1], strides = [1, 1, 1]} : vector<16x8x1xf32> to vector<14x7x1xf32>
    %22 = vector.broadcast %20 : vector<14x7x1xf32> to vector<14x7x32xf32>
    %23 = vector.broadcast %19 : vector<1x1x32xf32> to vector<14x7x32xf32>
    %24 = arith.mulf %22, %23 : vector<14x7x32xf32>
    %25 = arith.addf %13, %24 : vector<14x7x32xf32>
    %26 = vector.broadcast %21 : vector<14x7x1xf32> to vector<14x7x32xf32>
    %27 = vector.broadcast %19 : vector<1x1x32xf32> to vector<14x7x32xf32>
    %28 = arith.mulf %26, %27 : vector<14x7x32xf32>
    %29 = arith.addf %17, %28 : vector<14x7x32xf32>
    %c2 = arith.constant 2 : index
    %c0_15 = arith.constant 0 : index
    %c0_16 = arith.constant 0 : index
    %c0_17 = arith.constant 0 : index
    %30 = vector.load %arg3[%c2, %c0_15, %c0_16, %c0_17] : memref<9x1x1x32xf32, #tpu.memory_space<vmem>>, vector<1x1x1x32xf32>
    %31 = vector.shape_cast %30 : vector<1x1x1x32xf32> to vector<1x1x32xf32>
    %32 = vector.extract_strided_slice %1 {offsets = [0, 1, 0], sizes = [14, 7, 1], strides = [1, 1, 1]} : vector<16x8x1xf32> to vector<14x7x1xf32>
    %33 = vector.extract_strided_slice %3 {offsets = [0, 1, 0], sizes = [14, 7, 1], strides = [1, 1, 1]} : vector<16x8x1xf32> to vector<14x7x1xf32>
    %34 = vector.broadcast %32 : vector<14x7x1xf32> to vector<14x7x32xf32>
    %35 = vector.broadcast %31 : vector<1x1x32xf32> to vector<14x7x32xf32>
    %36 = arith.mulf %34, %35 : vector<14x7x32xf32>
    %37 = arith.addf %25, %36 : vector<14x7x32xf32>
    %38 = vector.broadcast %33 : vector<14x7x1xf32> to vector<14x7x32xf32>
    %39 = vector.broadcast %31 : vector<1x1x32xf32> to vector<14x7x32xf32>
    %40 = arith.mulf %38, %39 : vector<14x7x32xf32>
    %41 = arith.addf %29, %40 : vector<14x7x32xf32>
    %c3 = arith.constant 3 : index
    %c0_18 = arith.constant 0 : index
    %c0_19 = arith.constant 0 : index
    %c0_20 = arith.constant 0 : index
    %42 = vector.load %arg3[%c3, %c0_18, %c0_19, %c0_20] : memref<9x1x1x32xf32, #tpu.memory_space<vmem>>, vector<1x1x1x32xf32>
    %43 = vector.shape_cast %42 : vector<1x1x1x32xf32> to vector<1x1x32xf32>
    %44 = vector.extract_strided_slice %1 {offsets = [1, 0, 0], sizes = [14, 7, 1], strides = [1, 1, 1]} : vector<16x8x1xf32> to vector<14x7x1xf32>
    %45 = vector.extract_strided_slice %3 {offsets = [1, 0, 0], sizes = [14, 7, 1], strides = [1, 1, 1]} : vector<16x8x1xf32> to vector<14x7x1xf32>
    %46 = vector.broadcast %44 : vector<14x7x1xf32> to vector<14x7x32xf32>
    %47 = vector.broadcast %43 : vector<1x1x32xf32> to vector<14x7x32xf32>
    %48 = arith.mulf %46, %47 : vector<14x7x32xf32>
    %49 = arith.addf %37, %48 : vector<14x7x32xf32>
    %50 = vector.broadcast %45 : vector<14x7x1xf32> to vector<14x7x32xf32>
    %51 = vector.broadcast %43 : vector<1x1x32xf32> to vector<14x7x32xf32>
    %52 = arith.mulf %50, %51 : vector<14x7x32xf32>
    %53 = arith.addf %41, %52 : vector<14x7x32xf32>
    %c4 = arith.constant 4 : index
    %c0_21 = arith.constant 0 : index
    %c0_22 = arith.constant 0 : index
    %c0_23 = arith.constant 0 : index
    %54 = vector.load %arg3[%c4, %c0_21, %c0_22, %c0_23] : memref<9x1x1x32xf32, #tpu.memory_space<vmem>>, vector<1x1x1x32xf32>
    %55 = vector.shape_cast %54 : vector<1x1x1x32xf32> to vector<1x1x32xf32>
    %56 = vector.extract_strided_slice %3 {offsets = [1, 0, 0], sizes = [14, 7, 1], strides = [1, 1, 1]} : vector<16x8x1xf32> to vector<14x7x1xf32>
    %57 = vector.extract_strided_slice %1 {offsets = [1, 1, 0], sizes = [14, 7, 1], strides = [1, 1, 1]} : vector<16x8x1xf32> to vector<14x7x1xf32>
    %58 = vector.broadcast %56 : vector<14x7x1xf32> to vector<14x7x32xf32>
    %59 = vector.broadcast %55 : vector<1x1x32xf32> to vector<14x7x32xf32>
    %60 = arith.mulf %58, %59 : vector<14x7x32xf32>
    %61 = arith.addf %49, %60 : vector<14x7x32xf32>
    %62 = vector.broadcast %57 : vector<14x7x1xf32> to vector<14x7x32xf32>
    %63 = vector.broadcast %55 : vector<1x1x32xf32> to vector<14x7x32xf32>
    %64 = arith.mulf %62, %63 : vector<14x7x32xf32>
    %65 = arith.addf %53, %64 : vector<14x7x32xf32>
    %c5 = arith.constant 5 : index
    %c0_24 = arith.constant 0 : index
    %c0_25 = arith.constant 0 : index
    %c0_26 = arith.constant 0 : index
    %66 = vector.load %arg3[%c5, %c0_24, %c0_25, %c0_26] : memref<9x1x1x32xf32, #tpu.memory_space<vmem>>, vector<1x1x1x32xf32>
    %67 = vector.shape_cast %66 : vector<1x1x1x32xf32> to vector<1x1x32xf32>
    %68 = vector.extract_strided_slice %1 {offsets = [1, 1, 0], sizes = [14, 7, 1], strides = [1, 1, 1]} : vector<16x8x1xf32> to vector<14x7x1xf32>
    %69 = vector.extract_strided_slice %3 {offsets = [1, 1, 0], sizes = [14, 7, 1], strides = [1, 1, 1]} : vector<16x8x1xf32> to vector<14x7x1xf32>
    %70 = vector.broadcast %68 : vector<14x7x1xf32> to vector<14x7x32xf32>
    %71 = vector.broadcast %67 : vector<1x1x32xf32> to vector<14x7x32xf32>
    %72 = arith.mulf %70, %71 : vector<14x7x32xf32>
    %73 = arith.addf %61, %72 : vector<14x7x32xf32>
    %74 = vector.broadcast %69 : vector<14x7x1xf32> to vector<14x7x32xf32>
    %75 = vector.broadcast %67 : vector<1x1x32xf32> to vector<14x7x32xf32>
    %76 = arith.mulf %74, %75 : vector<14x7x32xf32>
    %77 = arith.addf %65, %76 : vector<14x7x32xf32>
    %c6 = arith.constant 6 : index
    %c0_27 = arith.constant 0 : index
    %c0_28 = arith.constant 0 : index
    %c0_29 = arith.constant 0 : index
    %78 = vector.load %arg3[%c6, %c0_27, %c0_28, %c0_29] : memref<9x1x1x32xf32, #tpu.memory_space<vmem>>, vector<1x1x1x32xf32>
    %79 = vector.shape_cast %78 : vector<1x1x1x32xf32> to vector<1x1x32xf32>
    %80 = vector.extract_strided_slice %1 {offsets = [2, 0, 0], sizes = [14, 7, 1], strides = [1, 1, 1]} : vector<16x8x1xf32> to vector<14x7x1xf32>
    %81 = vector.extract_strided_slice %3 {offsets = [2, 0, 0], sizes = [14, 7, 1], strides = [1, 1, 1]} : vector<16x8x1xf32> to vector<14x7x1xf32>
    %82 = vector.broadcast %80 : vector<14x7x1xf32> to vector<14x7x32xf32>
    %83 = vector.broadcast %79 : vector<1x1x32xf32> to vector<14x7x32xf32>
    %84 = arith.mulf %82, %83 : vector<14x7x32xf32>
    %85 = arith.addf %73, %84 : vector<14x7x32xf32>
    %86 = vector.broadcast %81 : vector<14x7x1xf32> to vector<14x7x32xf32>
    %87 = vector.broadcast %79 : vector<1x1x32xf32> to vector<14x7x32xf32>
    %88 = arith.mulf %86, %87 : vector<14x7x32xf32>
    %89 = arith.addf %77, %88 : vector<14x7x32xf32>
    %c7 = arith.constant 7 : index
    %c0_30 = arith.constant 0 : index
    %c0_31 = arith.constant 0 : index
    %c0_32 = arith.constant 0 : index
    %90 = vector.load %arg3[%c7, %c0_30, %c0_31, %c0_32] : memref<9x1x1x32xf32, #tpu.memory_space<vmem>>, vector<1x1x1x32xf32>
    %91 = vector.shape_cast %90 : vector<1x1x1x32xf32> to vector<1x1x32xf32>
    %92 = vector.extract_strided_slice %3 {offsets = [2, 0, 0], sizes = [14, 7, 1], strides = [1, 1, 1]} : vector<16x8x1xf32> to vector<14x7x1xf32>
    %93 = vector.extract_strided_slice %1 {offsets = [2, 1, 0], sizes = [14, 7, 1], strides = [1, 1, 1]} : vector<16x8x1xf32> to vector<14x7x1xf32>
    %94 = vector.broadcast %92 : vector<14x7x1xf32> to vector<14x7x32xf32>
    %95 = vector.broadcast %91 : vector<1x1x32xf32> to vector<14x7x32xf32>
    %96 = arith.mulf %94, %95 : vector<14x7x32xf32>
    %97 = arith.addf %85, %96 : vector<14x7x32xf32>
    %98 = vector.broadcast %93 : vector<14x7x1xf32> to vector<14x7x32xf32>
    %99 = vector.broadcast %91 : vector<1x1x32xf32> to vector<14x7x32xf32>
    %100 = arith.mulf %98, %99 : vector<14x7x32xf32>
    %101 = arith.addf %89, %100 : vector<14x7x32xf32>
    %c8 = arith.constant 8 : index
    %c0_33 = arith.constant 0 : index
    %c0_34 = arith.constant 0 : index
    %c0_35 = arith.constant 0 : index
    %102 = vector.load %arg3[%c8, %c0_33, %c0_34, %c0_35] : memref<9x1x1x32xf32, #tpu.memory_space<vmem>>, vector<1x1x1x32xf32>
    %103 = vector.shape_cast %102 : vector<1x1x1x32xf32> to vector<1x1x32xf32>
    %104 = vector.extract_strided_slice %1 {offsets = [2, 1, 0], sizes = [14, 7, 1], strides = [1, 1, 1]} : vector<16x8x1xf32> to vector<14x7x1xf32>
    %105 = vector.extract_strided_slice %3 {offsets = [2, 1, 0], sizes = [14, 7, 1], strides = [1, 1, 1]} : vector<16x8x1xf32> to vector<14x7x1xf32>
    %106 = vector.broadcast %104 : vector<14x7x1xf32> to vector<14x7x32xf32>
    %107 = vector.broadcast %103 : vector<1x1x32xf32> to vector<14x7x32xf32>
    %108 = arith.mulf %106, %107 : vector<14x7x32xf32>
    %109 = arith.addf %97, %108 : vector<14x7x32xf32>
    %110 = vector.broadcast %105 : vector<14x7x1xf32> to vector<14x7x32xf32>
    %111 = vector.broadcast %103 : vector<1x1x32xf32> to vector<14x7x32xf32>
    %112 = arith.mulf %110, %111 : vector<14x7x32xf32>
    %113 = arith.addf %101, %112 : vector<14x7x32xf32>
    %c0_36 = arith.constant 0 : index
    %c0_37 = arith.constant 0 : index
    %c0_38 = arith.constant 0 : index
    %114 = vector.load %arg4[%c0_36, %c0_37, %c0_38] : memref<1x1x32xf32, #tpu.memory_space<vmem>>, vector<1x1x32xf32>
    %115 = vector.broadcast %114 : vector<1x1x32xf32> to vector<14x7x32xf32>
    %116 = arith.addf %109, %115 : vector<14x7x32xf32>
    %cst_39 = arith.constant 0.000000e+00 : f32
    %117 = vector.broadcast %cst_39 : f32 to vector<14x7x32xf32>
    %118 = arith.cmpf ogt, %116, %117 : vector<14x7x32xf32>
    %cst_40 = arith.constant 1.000000e-01 : f32
    %119 = vector.broadcast %cst_40 : f32 to vector<14x7x32xf32>
    %120 = arith.mulf %119, %116 : vector<14x7x32xf32>
    %121 = arith.select %118, %116, %120 : vector<14x7x32xi1>, vector<14x7x32xf32>
    %122 = vector.broadcast %114 : vector<1x1x32xf32> to vector<14x7x32xf32>
    %123 = arith.addf %113, %122 : vector<14x7x32xf32>
    %cst_41 = arith.constant 0.000000e+00 : f32
    %124 = vector.broadcast %cst_41 : f32 to vector<14x7x32xf32>
    %125 = arith.cmpf ogt, %123, %124 : vector<14x7x32xf32>
    %cst_42 = arith.constant 1.000000e-01 : f32
    %126 = vector.broadcast %cst_42 : f32 to vector<14x7x32xf32>
    %127 = arith.mulf %126, %123 : vector<14x7x32xf32>
    %128 = arith.select %125, %123, %127 : vector<14x7x32xi1>, vector<14x7x32xf32>
    %129 = arith.maximumf %121, %128 : vector<14x7x32xf32>
    %130 = vector.extract_strided_slice %129 {offsets = [0, 0, 0], sizes = [1, 7, 32], strides = [1, 1, 1]} : vector<14x7x32xf32> to vector<1x7x32xf32>
    %131 = vector.shape_cast %130 : vector<1x7x32xf32> to vector<7x32xf32>
    %132 = vector.extract_strided_slice %129 {offsets = [1, 0, 0], sizes = [1, 7, 32], strides = [1, 1, 1]} : vector<14x7x32xf32> to vector<1x7x32xf32>
    %133 = vector.shape_cast %132 : vector<1x7x32xf32> to vector<7x32xf32>
    %134 = arith.maximumf %131, %133 : vector<7x32xf32>
    %135 = vector.extract_strided_slice %129 {offsets = [2, 0, 0], sizes = [1, 7, 32], strides = [1, 1, 1]} : vector<14x7x32xf32> to vector<1x7x32xf32>
    %136 = vector.shape_cast %135 : vector<1x7x32xf32> to vector<7x32xf32>
    %137 = vector.extract_strided_slice %129 {offsets = [3, 0, 0], sizes = [1, 7, 32], strides = [1, 1, 1]} : vector<14x7x32xf32> to vector<1x7x32xf32>
    %138 = vector.shape_cast %137 : vector<1x7x32xf32> to vector<7x32xf32>
    %139 = arith.maximumf %136, %138 : vector<7x32xf32>
    %140 = vector.extract_strided_slice %129 {offsets = [4, 0, 0], sizes = [1, 7, 32], strides = [1, 1, 1]} : vector<14x7x32xf32> to vector<1x7x32xf32>
    %141 = vector.shape_cast %140 : vector<1x7x32xf32> to vector<7x32xf32>
    %142 = vector.extract_strided_slice %129 {offsets = [5, 0, 0], sizes = [1, 7, 32], strides = [1, 1, 1]} : vector<14x7x32xf32> to vector<1x7x32xf32>
    %143 = vector.shape_cast %142 : vector<1x7x32xf32> to vector<7x32xf32>
    %144 = arith.maximumf %141, %143 : vector<7x32xf32>
    %145 = vector.extract_strided_slice %129 {offsets = [6, 0, 0], sizes = [1, 7, 32], strides = [1, 1, 1]} : vector<14x7x32xf32> to vector<1x7x32xf32>
    %146 = vector.shape_cast %145 : vector<1x7x32xf32> to vector<7x32xf32>
    %147 = vector.extract_strided_slice %129 {offsets = [7, 0, 0], sizes = [1, 7, 32], strides = [1, 1, 1]} : vector<14x7x32xf32> to vector<1x7x32xf32>
    %148 = vector.shape_cast %147 : vector<1x7x32xf32> to vector<7x32xf32>
    %149 = arith.maximumf %146, %148 : vector<7x32xf32>
    %150 = vector.extract_strided_slice %129 {offsets = [8, 0, 0], sizes = [1, 7, 32], strides = [1, 1, 1]} : vector<14x7x32xf32> to vector<1x7x32xf32>
    %151 = vector.shape_cast %150 : vector<1x7x32xf32> to vector<7x32xf32>
    %152 = vector.extract_strided_slice %129 {offsets = [9, 0, 0], sizes = [1, 7, 32], strides = [1, 1, 1]} : vector<14x7x32xf32> to vector<1x7x32xf32>
    %153 = vector.shape_cast %152 : vector<1x7x32xf32> to vector<7x32xf32>
    %154 = arith.maximumf %151, %153 : vector<7x32xf32>
    %155 = vector.extract_strided_slice %129 {offsets = [10, 0, 0], sizes = [1, 7, 32], strides = [1, 1, 1]} : vector<14x7x32xf32> to vector<1x7x32xf32>
    %156 = vector.shape_cast %155 : vector<1x7x32xf32> to vector<7x32xf32>
    %157 = vector.extract_strided_slice %129 {offsets = [11, 0, 0], sizes = [1, 7, 32], strides = [1, 1, 1]} : vector<14x7x32xf32> to vector<1x7x32xf32>
    %158 = vector.shape_cast %157 : vector<1x7x32xf32> to vector<7x32xf32>
    %159 = arith.maximumf %156, %158 : vector<7x32xf32>
    %c0_43 = arith.constant 0 : index
    %c0_44 = arith.constant 0 : index
    %160 = vector.load %arg6[%c0_43, %c0_44] : memref<1x16xf32, #tpu.memory_space<vmem>>, vector<1x16xf32>
    %cst_45 = arith.constant 0.000000e+00 : f32
    %161 = vector.broadcast %cst_45 : f32 to vector<5x16xf32>
    %162 = vector.broadcast %160 : vector<1x16xf32> to vector<5x16xf32>
    %163 = arith.addf %161, %162 : vector<5x16xf32>
    %164 = vector.extract_strided_slice %134 {offsets = [0, 0], sizes = [5, 32], strides = [1, 1]} : vector<7x32xf32> to vector<5x32xf32>
    %c0_46 = arith.constant 0 : index
    %c0_47 = arith.constant 0 : index
    %c0_48 = arith.constant 0 : index
    %165 = vector.load %arg5[%c0_46, %c0_47, %c0_48] : memref<9x32x16xf32, #tpu.memory_space<vmem>>, vector<1x32x16xf32>
    %166 = vector.shape_cast %165 : vector<1x32x16xf32> to vector<32x16xf32>
    %cst_49 = arith.constant dense<0.000000e+00> : vector<5x16xf32>
    %167 = tpu.matmul %164, %166, %cst_49 {dimension_numbers = #tpu.dot_dimension_numbers<[1], [0], [0], [1], [0, 0, 1, 1], [], []>} : vector<5x32xf32>, vector<32x16xf32>, vector<5x16xf32> -> vector<5x16xf32>
    %168 = arith.addf %163, %167 : vector<5x16xf32>
    %169 = vector.extract_strided_slice %134 {offsets = [1, 0], sizes = [5, 32], strides = [1, 1]} : vector<7x32xf32> to vector<5x32xf32>
    %c1_50 = arith.constant 1 : index
    %c0_51 = arith.constant 0 : index
    %c0_52 = arith.constant 0 : index
    %170 = vector.load %arg5[%c1_50, %c0_51, %c0_52] : memref<9x32x16xf32, #tpu.memory_space<vmem>>, vector<1x32x16xf32>
    %171 = vector.shape_cast %170 : vector<1x32x16xf32> to vector<32x16xf32>
    %cst_53 = arith.constant dense<0.000000e+00> : vector<5x16xf32>
    %172 = tpu.matmul %169, %171, %cst_53 {dimension_numbers = #tpu.dot_dimension_numbers<[1], [0], [0], [1], [0, 0, 1, 1], [], []>} : vector<5x32xf32>, vector<32x16xf32>, vector<5x16xf32> -> vector<5x16xf32>
    %173 = arith.addf %168, %172 : vector<5x16xf32>
    %174 = vector.extract_strided_slice %134 {offsets = [2, 0], sizes = [5, 32], strides = [1, 1]} : vector<7x32xf32> to vector<5x32xf32>
    %c2_54 = arith.constant 2 : index
    %c0_55 = arith.constant 0 : index
    %c0_56 = arith.constant 0 : index
    %175 = vector.load %arg5[%c2_54, %c0_55, %c0_56] : memref<9x32x16xf32, #tpu.memory_space<vmem>>, vector<1x32x16xf32>
    %176 = vector.shape_cast %175 : vector<1x32x16xf32> to vector<32x16xf32>
    %cst_57 = arith.constant dense<0.000000e+00> : vector<5x16xf32>
    %177 = tpu.matmul %174, %176, %cst_57 {dimension_numbers = #tpu.dot_dimension_numbers<[1], [0], [0], [1], [0, 0, 1, 1], [], []>} : vector<5x32xf32>, vector<32x16xf32>, vector<5x16xf32> -> vector<5x16xf32>
    %178 = arith.addf %173, %177 : vector<5x16xf32>
    %179 = vector.extract_strided_slice %139 {offsets = [0, 0], sizes = [5, 32], strides = [1, 1]} : vector<7x32xf32> to vector<5x32xf32>
    %c3_58 = arith.constant 3 : index
    %c0_59 = arith.constant 0 : index
    %c0_60 = arith.constant 0 : index
    %180 = vector.load %arg5[%c3_58, %c0_59, %c0_60] : memref<9x32x16xf32, #tpu.memory_space<vmem>>, vector<1x32x16xf32>
    %181 = vector.shape_cast %180 : vector<1x32x16xf32> to vector<32x16xf32>
    %cst_61 = arith.constant dense<0.000000e+00> : vector<5x16xf32>
    %182 = tpu.matmul %179, %181, %cst_61 {dimension_numbers = #tpu.dot_dimension_numbers<[1], [0], [0], [1], [0, 0, 1, 1], [], []>} : vector<5x32xf32>, vector<32x16xf32>, vector<5x16xf32> -> vector<5x16xf32>
    %183 = arith.addf %178, %182 : vector<5x16xf32>
    %184 = vector.extract_strided_slice %139 {offsets = [1, 0], sizes = [5, 32], strides = [1, 1]} : vector<7x32xf32> to vector<5x32xf32>
    %c4_62 = arith.constant 4 : index
    %c0_63 = arith.constant 0 : index
    %c0_64 = arith.constant 0 : index
    %185 = vector.load %arg5[%c4_62, %c0_63, %c0_64] : memref<9x32x16xf32, #tpu.memory_space<vmem>>, vector<1x32x16xf32>
    %186 = vector.shape_cast %185 : vector<1x32x16xf32> to vector<32x16xf32>
    %cst_65 = arith.constant dense<0.000000e+00> : vector<5x16xf32>
    %187 = tpu.matmul %184, %186, %cst_65 {dimension_numbers = #tpu.dot_dimension_numbers<[1], [0], [0], [1], [0, 0, 1, 1], [], []>} : vector<5x32xf32>, vector<32x16xf32>, vector<5x16xf32> -> vector<5x16xf32>
    %188 = arith.addf %183, %187 : vector<5x16xf32>
    %189 = vector.extract_strided_slice %139 {offsets = [2, 0], sizes = [5, 32], strides = [1, 1]} : vector<7x32xf32> to vector<5x32xf32>
    %c5_66 = arith.constant 5 : index
    %c0_67 = arith.constant 0 : index
    %c0_68 = arith.constant 0 : index
    %190 = vector.load %arg5[%c5_66, %c0_67, %c0_68] : memref<9x32x16xf32, #tpu.memory_space<vmem>>, vector<1x32x16xf32>
    %191 = vector.shape_cast %190 : vector<1x32x16xf32> to vector<32x16xf32>
    %cst_69 = arith.constant dense<0.000000e+00> : vector<5x16xf32>
    %192 = tpu.matmul %189, %191, %cst_69 {dimension_numbers = #tpu.dot_dimension_numbers<[1], [0], [0], [1], [0, 0, 1, 1], [], []>} : vector<5x32xf32>, vector<32x16xf32>, vector<5x16xf32> -> vector<5x16xf32>
    %193 = arith.addf %188, %192 : vector<5x16xf32>
    %194 = vector.extract_strided_slice %144 {offsets = [0, 0], sizes = [5, 32], strides = [1, 1]} : vector<7x32xf32> to vector<5x32xf32>
    %c6_70 = arith.constant 6 : index
    %c0_71 = arith.constant 0 : index
    %c0_72 = arith.constant 0 : index
    %195 = vector.load %arg5[%c6_70, %c0_71, %c0_72] : memref<9x32x16xf32, #tpu.memory_space<vmem>>, vector<1x32x16xf32>
    %196 = vector.shape_cast %195 : vector<1x32x16xf32> to vector<32x16xf32>
    %cst_73 = arith.constant dense<0.000000e+00> : vector<5x16xf32>
    %197 = tpu.matmul %194, %196, %cst_73 {dimension_numbers = #tpu.dot_dimension_numbers<[1], [0], [0], [1], [0, 0, 1, 1], [], []>} : vector<5x32xf32>, vector<32x16xf32>, vector<5x16xf32> -> vector<5x16xf32>
    %198 = arith.addf %193, %197 : vector<5x16xf32>
    %199 = vector.extract_strided_slice %144 {offsets = [1, 0], sizes = [5, 32], strides = [1, 1]} : vector<7x32xf32> to vector<5x32xf32>
    %c7_74 = arith.constant 7 : index
    %c0_75 = arith.constant 0 : index
    %c0_76 = arith.constant 0 : index
    %200 = vector.load %arg5[%c7_74, %c0_75, %c0_76] : memref<9x32x16xf32, #tpu.memory_space<vmem>>, vector<1x32x16xf32>
    %201 = vector.shape_cast %200 : vector<1x32x16xf32> to vector<32x16xf32>
    %cst_77 = arith.constant dense<0.000000e+00> : vector<5x16xf32>
    %202 = tpu.matmul %199, %201, %cst_77 {dimension_numbers = #tpu.dot_dimension_numbers<[1], [0], [0], [1], [0, 0, 1, 1], [], []>} : vector<5x32xf32>, vector<32x16xf32>, vector<5x16xf32> -> vector<5x16xf32>
    %203 = arith.addf %198, %202 : vector<5x16xf32>
    %204 = vector.extract_strided_slice %144 {offsets = [2, 0], sizes = [5, 32], strides = [1, 1]} : vector<7x32xf32> to vector<5x32xf32>
    %c8_78 = arith.constant 8 : index
    %c0_79 = arith.constant 0 : index
    %c0_80 = arith.constant 0 : index
    %205 = vector.load %arg5[%c8_78, %c0_79, %c0_80] : memref<9x32x16xf32, #tpu.memory_space<vmem>>, vector<1x32x16xf32>
    %206 = vector.shape_cast %205 : vector<1x32x16xf32> to vector<32x16xf32>
    %cst_81 = arith.constant dense<0.000000e+00> : vector<5x16xf32>
    %207 = tpu.matmul %204, %206, %cst_81 {dimension_numbers = #tpu.dot_dimension_numbers<[1], [0], [0], [1], [0, 0, 1, 1], [], []>} : vector<5x32xf32>, vector<32x16xf32>, vector<5x16xf32> -> vector<5x16xf32>
    %208 = arith.addf %203, %207 : vector<5x16xf32>
    %cst_82 = arith.constant 0.000000e+00 : f32
    %209 = vector.broadcast %cst_82 : f32 to vector<5x16xf32>
    %210 = arith.cmpf ogt, %208, %209 : vector<5x16xf32>
    %cst_83 = arith.constant 1.000000e-01 : f32
    %211 = vector.broadcast %cst_83 : f32 to vector<5x16xf32>
    %212 = arith.mulf %211, %208 : vector<5x16xf32>
    %213 = arith.select %210, %208, %212 : vector<5x16xi1>, vector<5x16xf32>
    %cst_84 = arith.constant 0.000000e+00 : f32
    %214 = vector.broadcast %cst_84 : f32 to vector<5x16xf32>
    %215 = vector.broadcast %160 : vector<1x16xf32> to vector<5x16xf32>
    %216 = arith.addf %214, %215 : vector<5x16xf32>
    %217 = vector.extract_strided_slice %139 {offsets = [0, 0], sizes = [5, 32], strides = [1, 1]} : vector<7x32xf32> to vector<5x32xf32>
    %c0_85 = arith.constant 0 : index
    %c0_86 = arith.constant 0 : index
    %c0_87 = arith.constant 0 : index
    %218 = vector.load %arg5[%c0_85, %c0_86, %c0_87] : memref<9x32x16xf32, #tpu.memory_space<vmem>>, vector<1x32x16xf32>
    %219 = vector.shape_cast %218 : vector<1x32x16xf32> to vector<32x16xf32>
    %cst_88 = arith.constant dense<0.000000e+00> : vector<5x16xf32>
    %220 = tpu.matmul %217, %219, %cst_88 {dimension_numbers = #tpu.dot_dimension_numbers<[1], [0], [0], [1], [0, 0, 1, 1], [], []>} : vector<5x32xf32>, vector<32x16xf32>, vector<5x16xf32> -> vector<5x16xf32>
    %221 = arith.addf %216, %220 : vector<5x16xf32>
    %222 = vector.extract_strided_slice %139 {offsets = [1, 0], sizes = [5, 32], strides = [1, 1]} : vector<7x32xf32> to vector<5x32xf32>
    %c1_89 = arith.constant 1 : index
    %c0_90 = arith.constant 0 : index
    %c0_91 = arith.constant 0 : index
    %223 = vector.load %arg5[%c1_89, %c0_90, %c0_91] : memref<9x32x16xf32, #tpu.memory_space<vmem>>, vector<1x32x16xf32>
    %224 = vector.shape_cast %223 : vector<1x32x16xf32> to vector<32x16xf32>
    %cst_92 = arith.constant dense<0.000000e+00> : vector<5x16xf32>
    %225 = tpu.matmul %222, %224, %cst_92 {dimension_numbers = #tpu.dot_dimension_numbers<[1], [0], [0], [1], [0, 0, 1, 1], [], []>} : vector<5x32xf32>, vector<32x16xf32>, vector<5x16xf32> -> vector<5x16xf32>
    %226 = arith.addf %221, %225 : vector<5x16xf32>
    %227 = vector.extract_strided_slice %139 {offsets = [2, 0], sizes = [5, 32], strides = [1, 1]} : vector<7x32xf32> to vector<5x32xf32>
    %c2_93 = arith.constant 2 : index
    %c0_94 = arith.constant 0 : index
    %c0_95 = arith.constant 0 : index
    %228 = vector.load %arg5[%c2_93, %c0_94, %c0_95] : memref<9x32x16xf32, #tpu.memory_space<vmem>>, vector<1x32x16xf32>
    %229 = vector.shape_cast %228 : vector<1x32x16xf32> to vector<32x16xf32>
    %cst_96 = arith.constant dense<0.000000e+00> : vector<5x16xf32>
    %230 = tpu.matmul %227, %229, %cst_96 {dimension_numbers = #tpu.dot_dimension_numbers<[1], [0], [0], [1], [0, 0, 1, 1], [], []>} : vector<5x32xf32>, vector<32x16xf32>, vector<5x16xf32> -> vector<5x16xf32>
    %231 = arith.addf %226, %230 : vector<5x16xf32>
    %232 = vector.extract_strided_slice %144 {offsets = [0, 0], sizes = [5, 32], strides = [1, 1]} : vector<7x32xf32> to vector<5x32xf32>
    %c3_97 = arith.constant 3 : index
    %c0_98 = arith.constant 0 : index
    %c0_99 = arith.constant 0 : index
    %233 = vector.load %arg5[%c3_97, %c0_98, %c0_99] : memref<9x32x16xf32, #tpu.memory_space<vmem>>, vector<1x32x16xf32>
    %234 = vector.shape_cast %233 : vector<1x32x16xf32> to vector<32x16xf32>
    %cst_100 = arith.constant dense<0.000000e+00> : vector<5x16xf32>
    %235 = tpu.matmul %232, %234, %cst_100 {dimension_numbers = #tpu.dot_dimension_numbers<[1], [0], [0], [1], [0, 0, 1, 1], [], []>} : vector<5x32xf32>, vector<32x16xf32>, vector<5x16xf32> -> vector<5x16xf32>
    %236 = arith.addf %231, %235 : vector<5x16xf32>
    %237 = vector.extract_strided_slice %144 {offsets = [1, 0], sizes = [5, 32], strides = [1, 1]} : vector<7x32xf32> to vector<5x32xf32>
    %c4_101 = arith.constant 4 : index
    %c0_102 = arith.constant 0 : index
    %c0_103 = arith.constant 0 : index
    %238 = vector.load %arg5[%c4_101, %c0_102, %c0_103] : memref<9x32x16xf32, #tpu.memory_space<vmem>>, vector<1x32x16xf32>
    %239 = vector.shape_cast %238 : vector<1x32x16xf32> to vector<32x16xf32>
    %cst_104 = arith.constant dense<0.000000e+00> : vector<5x16xf32>
    %240 = tpu.matmul %237, %239, %cst_104 {dimension_numbers = #tpu.dot_dimension_numbers<[1], [0], [0], [1], [0, 0, 1, 1], [], []>} : vector<5x32xf32>, vector<32x16xf32>, vector<5x16xf32> -> vector<5x16xf32>
    %241 = arith.addf %236, %240 : vector<5x16xf32>
    %242 = vector.extract_strided_slice %144 {offsets = [2, 0], sizes = [5, 32], strides = [1, 1]} : vector<7x32xf32> to vector<5x32xf32>
    %c5_105 = arith.constant 5 : index
    %c0_106 = arith.constant 0 : index
    %c0_107 = arith.constant 0 : index
    %243 = vector.load %arg5[%c5_105, %c0_106, %c0_107] : memref<9x32x16xf32, #tpu.memory_space<vmem>>, vector<1x32x16xf32>
    %244 = vector.shape_cast %243 : vector<1x32x16xf32> to vector<32x16xf32>
    %cst_108 = arith.constant dense<0.000000e+00> : vector<5x16xf32>
    %245 = tpu.matmul %242, %244, %cst_108 {dimension_numbers = #tpu.dot_dimension_numbers<[1], [0], [0], [1], [0, 0, 1, 1], [], []>} : vector<5x32xf32>, vector<32x16xf32>, vector<5x16xf32> -> vector<5x16xf32>
    %246 = arith.addf %241, %245 : vector<5x16xf32>
    %247 = vector.extract_strided_slice %149 {offsets = [0, 0], sizes = [5, 32], strides = [1, 1]} : vector<7x32xf32> to vector<5x32xf32>
    %c6_109 = arith.constant 6 : index
    %c0_110 = arith.constant 0 : index
    %c0_111 = arith.constant 0 : index
    %248 = vector.load %arg5[%c6_109, %c0_110, %c0_111] : memref<9x32x16xf32, #tpu.memory_space<vmem>>, vector<1x32x16xf32>
    %249 = vector.shape_cast %248 : vector<1x32x16xf32> to vector<32x16xf32>
    %cst_112 = arith.constant dense<0.000000e+00> : vector<5x16xf32>
    %250 = tpu.matmul %247, %249, %cst_112 {dimension_numbers = #tpu.dot_dimension_numbers<[1], [0], [0], [1], [0, 0, 1, 1], [], []>} : vector<5x32xf32>, vector<32x16xf32>, vector<5x16xf32> -> vector<5x16xf32>
    %251 = arith.addf %246, %250 : vector<5x16xf32>
    %252 = vector.extract_strided_slice %149 {offsets = [1, 0], sizes = [5, 32], strides = [1, 1]} : vector<7x32xf32> to vector<5x32xf32>
    %c7_113 = arith.constant 7 : index
    %c0_114 = arith.constant 0 : index
    %c0_115 = arith.constant 0 : index
    %253 = vector.load %arg5[%c7_113, %c0_114, %c0_115] : memref<9x32x16xf32, #tpu.memory_space<vmem>>, vector<1x32x16xf32>
    %254 = vector.shape_cast %253 : vector<1x32x16xf32> to vector<32x16xf32>
    %cst_116 = arith.constant dense<0.000000e+00> : vector<5x16xf32>
    %255 = tpu.matmul %252, %254, %cst_116 {dimension_numbers = #tpu.dot_dimension_numbers<[1], [0], [0], [1], [0, 0, 1, 1], [], []>} : vector<5x32xf32>, vector<32x16xf32>, vector<5x16xf32> -> vector<5x16xf32>
    %256 = arith.addf %251, %255 : vector<5x16xf32>
    %257 = vector.extract_strided_slice %149 {offsets = [2, 0], sizes = [5, 32], strides = [1, 1]} : vector<7x32xf32> to vector<5x32xf32>
    %c8_117 = arith.constant 8 : index
    %c0_118 = arith.constant 0 : index
    %c0_119 = arith.constant 0 : index
    %258 = vector.load %arg5[%c8_117, %c0_118, %c0_119] : memref<9x32x16xf32, #tpu.memory_space<vmem>>, vector<1x32x16xf32>
    %259 = vector.shape_cast %258 : vector<1x32x16xf32> to vector<32x16xf32>
    %cst_120 = arith.constant dense<0.000000e+00> : vector<5x16xf32>
    %260 = tpu.matmul %257, %259, %cst_120 {dimension_numbers = #tpu.dot_dimension_numbers<[1], [0], [0], [1], [0, 0, 1, 1], [], []>} : vector<5x32xf32>, vector<32x16xf32>, vector<5x16xf32> -> vector<5x16xf32>
    %261 = arith.addf %256, %260 : vector<5x16xf32>
    %cst_121 = arith.constant 0.000000e+00 : f32
    %262 = vector.broadcast %cst_121 : f32 to vector<5x16xf32>
    %263 = arith.cmpf ogt, %261, %262 : vector<5x16xf32>
    %cst_122 = arith.constant 1.000000e-01 : f32
    %264 = vector.broadcast %cst_122 : f32 to vector<5x16xf32>
    %265 = arith.mulf %264, %261 : vector<5x16xf32>
    %266 = arith.select %263, %261, %265 : vector<5x16xi1>, vector<5x16xf32>
    %cst_123 = arith.constant 0.000000e+00 : f32
    %267 = vector.broadcast %cst_123 : f32 to vector<5x16xf32>
    %268 = vector.broadcast %160 : vector<1x16xf32> to vector<5x16xf32>
    %269 = arith.addf %267, %268 : vector<5x16xf32>
    %270 = vector.extract_strided_slice %144 {offsets = [0, 0], sizes = [5, 32], strides = [1, 1]} : vector<7x32xf32> to vector<5x32xf32>
    %c0_124 = arith.constant 0 : index
    %c0_125 = arith.constant 0 : index
    %c0_126 = arith.constant 0 : index
    %271 = vector.load %arg5[%c0_124, %c0_125, %c0_126] : memref<9x32x16xf32, #tpu.memory_space<vmem>>, vector<1x32x16xf32>
    %272 = vector.shape_cast %271 : vector<1x32x16xf32> to vector<32x16xf32>
    %cst_127 = arith.constant dense<0.000000e+00> : vector<5x16xf32>
    %273 = tpu.matmul %270, %272, %cst_127 {dimension_numbers = #tpu.dot_dimension_numbers<[1], [0], [0], [1], [0, 0, 1, 1], [], []>} : vector<5x32xf32>, vector<32x16xf32>, vector<5x16xf32> -> vector<5x16xf32>
    %274 = arith.addf %269, %273 : vector<5x16xf32>
    %275 = vector.extract_strided_slice %144 {offsets = [1, 0], sizes = [5, 32], strides = [1, 1]} : vector<7x32xf32> to vector<5x32xf32>
    %c1_128 = arith.constant 1 : index
    %c0_129 = arith.constant 0 : index
    %c0_130 = arith.constant 0 : index
    %276 = vector.load %arg5[%c1_128, %c0_129, %c0_130] : memref<9x32x16xf32, #tpu.memory_space<vmem>>, vector<1x32x16xf32>
    %277 = vector.shape_cast %276 : vector<1x32x16xf32> to vector<32x16xf32>
    %cst_131 = arith.constant dense<0.000000e+00> : vector<5x16xf32>
    %278 = tpu.matmul %275, %277, %cst_131 {dimension_numbers = #tpu.dot_dimension_numbers<[1], [0], [0], [1], [0, 0, 1, 1], [], []>} : vector<5x32xf32>, vector<32x16xf32>, vector<5x16xf32> -> vector<5x16xf32>
    %279 = arith.addf %274, %278 : vector<5x16xf32>
    %280 = vector.extract_strided_slice %144 {offsets = [2, 0], sizes = [5, 32], strides = [1, 1]} : vector<7x32xf32> to vector<5x32xf32>
    %c2_132 = arith.constant 2 : index
    %c0_133 = arith.constant 0 : index
    %c0_134 = arith.constant 0 : index
    %281 = vector.load %arg5[%c2_132, %c0_133, %c0_134] : memref<9x32x16xf32, #tpu.memory_space<vmem>>, vector<1x32x16xf32>
    %282 = vector.shape_cast %281 : vector<1x32x16xf32> to vector<32x16xf32>
    %cst_135 = arith.constant dense<0.000000e+00> : vector<5x16xf32>
    %283 = tpu.matmul %280, %282, %cst_135 {dimension_numbers = #tpu.dot_dimension_numbers<[1], [0], [0], [1], [0, 0, 1, 1], [], []>} : vector<5x32xf32>, vector<32x16xf32>, vector<5x16xf32> -> vector<5x16xf32>
    %284 = arith.addf %279, %283 : vector<5x16xf32>
    %285 = vector.extract_strided_slice %149 {offsets = [0, 0], sizes = [5, 32], strides = [1, 1]} : vector<7x32xf32> to vector<5x32xf32>
    %c3_136 = arith.constant 3 : index
    %c0_137 = arith.constant 0 : index
    %c0_138 = arith.constant 0 : index
    %286 = vector.load %arg5[%c3_136, %c0_137, %c0_138] : memref<9x32x16xf32, #tpu.memory_space<vmem>>, vector<1x32x16xf32>
    %287 = vector.shape_cast %286 : vector<1x32x16xf32> to vector<32x16xf32>
    %cst_139 = arith.constant dense<0.000000e+00> : vector<5x16xf32>
    %288 = tpu.matmul %285, %287, %cst_139 {dimension_numbers = #tpu.dot_dimension_numbers<[1], [0], [0], [1], [0, 0, 1, 1], [], []>} : vector<5x32xf32>, vector<32x16xf32>, vector<5x16xf32> -> vector<5x16xf32>
    %289 = arith.addf %284, %288 : vector<5x16xf32>
    %290 = vector.extract_strided_slice %149 {offsets = [1, 0], sizes = [5, 32], strides = [1, 1]} : vector<7x32xf32> to vector<5x32xf32>
    %c4_140 = arith.constant 4 : index
    %c0_141 = arith.constant 0 : index
    %c0_142 = arith.constant 0 : index
    %291 = vector.load %arg5[%c4_140, %c0_141, %c0_142] : memref<9x32x16xf32, #tpu.memory_space<vmem>>, vector<1x32x16xf32>
    %292 = vector.shape_cast %291 : vector<1x32x16xf32> to vector<32x16xf32>
    %cst_143 = arith.constant dense<0.000000e+00> : vector<5x16xf32>
    %293 = tpu.matmul %290, %292, %cst_143 {dimension_numbers = #tpu.dot_dimension_numbers<[1], [0], [0], [1], [0, 0, 1, 1], [], []>} : vector<5x32xf32>, vector<32x16xf32>, vector<5x16xf32> -> vector<5x16xf32>
    %294 = arith.addf %289, %293 : vector<5x16xf32>
    %295 = vector.extract_strided_slice %149 {offsets = [2, 0], sizes = [5, 32], strides = [1, 1]} : vector<7x32xf32> to vector<5x32xf32>
    %c5_144 = arith.constant 5 : index
    %c0_145 = arith.constant 0 : index
    %c0_146 = arith.constant 0 : index
    %296 = vector.load %arg5[%c5_144, %c0_145, %c0_146] : memref<9x32x16xf32, #tpu.memory_space<vmem>>, vector<1x32x16xf32>
    %297 = vector.shape_cast %296 : vector<1x32x16xf32> to vector<32x16xf32>
    %cst_147 = arith.constant dense<0.000000e+00> : vector<5x16xf32>
    %298 = tpu.matmul %295, %297, %cst_147 {dimension_numbers = #tpu.dot_dimension_numbers<[1], [0], [0], [1], [0, 0, 1, 1], [], []>} : vector<5x32xf32>, vector<32x16xf32>, vector<5x16xf32> -> vector<5x16xf32>
    %299 = arith.addf %294, %298 : vector<5x16xf32>
    %300 = vector.extract_strided_slice %154 {offsets = [0, 0], sizes = [5, 32], strides = [1, 1]} : vector<7x32xf32> to vector<5x32xf32>
    %c6_148 = arith.constant 6 : index
    %c0_149 = arith.constant 0 : index
    %c0_150 = arith.constant 0 : index
    %301 = vector.load %arg5[%c6_148, %c0_149, %c0_150] : memref<9x32x16xf32, #tpu.memory_space<vmem>>, vector<1x32x16xf32>
    %302 = vector.shape_cast %301 : vector<1x32x16xf32> to vector<32x16xf32>
    %cst_151 = arith.constant dense<0.000000e+00> : vector<5x16xf32>
    %303 = tpu.matmul %300, %302, %cst_151 {dimension_numbers = #tpu.dot_dimension_numbers<[1], [0], [0], [1], [0, 0, 1, 1], [], []>} : vector<5x32xf32>, vector<32x16xf32>, vector<5x16xf32> -> vector<5x16xf32>
    %304 = arith.addf %299, %303 : vector<5x16xf32>
    %305 = vector.extract_strided_slice %154 {offsets = [1, 0], sizes = [5, 32], strides = [1, 1]} : vector<7x32xf32> to vector<5x32xf32>
    %c7_152 = arith.constant 7 : index
    %c0_153 = arith.constant 0 : index
    %c0_154 = arith.constant 0 : index
    %306 = vector.load %arg5[%c7_152, %c0_153, %c0_154] : memref<9x32x16xf32, #tpu.memory_space<vmem>>, vector<1x32x16xf32>
    %307 = vector.shape_cast %306 : vector<1x32x16xf32> to vector<32x16xf32>
    %cst_155 = arith.constant dense<0.000000e+00> : vector<5x16xf32>
    %308 = tpu.matmul %305, %307, %cst_155 {dimension_numbers = #tpu.dot_dimension_numbers<[1], [0], [0], [1], [0, 0, 1, 1], [], []>} : vector<5x32xf32>, vector<32x16xf32>, vector<5x16xf32> -> vector<5x16xf32>
    %309 = arith.addf %304, %308 : vector<5x16xf32>
    %310 = vector.extract_strided_slice %154 {offsets = [2, 0], sizes = [5, 32], strides = [1, 1]} : vector<7x32xf32> to vector<5x32xf32>
    %c8_156 = arith.constant 8 : index
    %c0_157 = arith.constant 0 : index
    %c0_158 = arith.constant 0 : index
    %311 = vector.load %arg5[%c8_156, %c0_157, %c0_158] : memref<9x32x16xf32, #tpu.memory_space<vmem>>, vector<1x32x16xf32>
    %312 = vector.shape_cast %311 : vector<1x32x16xf32> to vector<32x16xf32>
    %cst_159 = arith.constant dense<0.000000e+00> : vector<5x16xf32>
    %313 = tpu.matmul %310, %312, %cst_159 {dimension_numbers = #tpu.dot_dimension_numbers<[1], [0], [0], [1], [0, 0, 1, 1], [], []>} : vector<5x32xf32>, vector<32x16xf32>, vector<5x16xf32> -> vector<5x16xf32>
    %314 = arith.addf %309, %313 : vector<5x16xf32>
    %cst_160 = arith.constant 0.000000e+00 : f32
    %315 = vector.broadcast %cst_160 : f32 to vector<5x16xf32>
    %316 = arith.cmpf ogt, %314, %315 : vector<5x16xf32>
    %cst_161 = arith.constant 1.000000e-01 : f32
    %317 = vector.broadcast %cst_161 : f32 to vector<5x16xf32>
    %318 = arith.mulf %317, %314 : vector<5x16xf32>
    %319 = arith.select %316, %314, %318 : vector<5x16xi1>, vector<5x16xf32>
    %cst_162 = arith.constant 0.000000e+00 : f32
    %320 = vector.broadcast %cst_162 : f32 to vector<5x16xf32>
    %321 = vector.broadcast %160 : vector<1x16xf32> to vector<5x16xf32>
    %322 = arith.addf %320, %321 : vector<5x16xf32>
    %323 = vector.extract_strided_slice %149 {offsets = [0, 0], sizes = [5, 32], strides = [1, 1]} : vector<7x32xf32> to vector<5x32xf32>
    %c0_163 = arith.constant 0 : index
    %c0_164 = arith.constant 0 : index
    %c0_165 = arith.constant 0 : index
    %324 = vector.load %arg5[%c0_163, %c0_164, %c0_165] : memref<9x32x16xf32, #tpu.memory_space<vmem>>, vector<1x32x16xf32>
    %325 = vector.shape_cast %324 : vector<1x32x16xf32> to vector<32x16xf32>
    %cst_166 = arith.constant dense<0.000000e+00> : vector<5x16xf32>
    %326 = tpu.matmul %323, %325, %cst_166 {dimension_numbers = #tpu.dot_dimension_numbers<[1], [0], [0], [1], [0, 0, 1, 1], [], []>} : vector<5x32xf32>, vector<32x16xf32>, vector<5x16xf32> -> vector<5x16xf32>
    %327 = arith.addf %322, %326 : vector<5x16xf32>
    %328 = vector.extract_strided_slice %149 {offsets = [1, 0], sizes = [5, 32], strides = [1, 1]} : vector<7x32xf32> to vector<5x32xf32>
    %c1_167 = arith.constant 1 : index
    %c0_168 = arith.constant 0 : index
    %c0_169 = arith.constant 0 : index
    %329 = vector.load %arg5[%c1_167, %c0_168, %c0_169] : memref<9x32x16xf32, #tpu.memory_space<vmem>>, vector<1x32x16xf32>
    %330 = vector.shape_cast %329 : vector<1x32x16xf32> to vector<32x16xf32>
    %cst_170 = arith.constant dense<0.000000e+00> : vector<5x16xf32>
    %331 = tpu.matmul %328, %330, %cst_170 {dimension_numbers = #tpu.dot_dimension_numbers<[1], [0], [0], [1], [0, 0, 1, 1], [], []>} : vector<5x32xf32>, vector<32x16xf32>, vector<5x16xf32> -> vector<5x16xf32>
    %332 = arith.addf %327, %331 : vector<5x16xf32>
    %333 = vector.extract_strided_slice %149 {offsets = [2, 0], sizes = [5, 32], strides = [1, 1]} : vector<7x32xf32> to vector<5x32xf32>
    %c2_171 = arith.constant 2 : index
    %c0_172 = arith.constant 0 : index
    %c0_173 = arith.constant 0 : index
    %334 = vector.load %arg5[%c2_171, %c0_172, %c0_173] : memref<9x32x16xf32, #tpu.memory_space<vmem>>, vector<1x32x16xf32>
    %335 = vector.shape_cast %334 : vector<1x32x16xf32> to vector<32x16xf32>
    %cst_174 = arith.constant dense<0.000000e+00> : vector<5x16xf32>
    %336 = tpu.matmul %333, %335, %cst_174 {dimension_numbers = #tpu.dot_dimension_numbers<[1], [0], [0], [1], [0, 0, 1, 1], [], []>} : vector<5x32xf32>, vector<32x16xf32>, vector<5x16xf32> -> vector<5x16xf32>
    %337 = arith.addf %332, %336 : vector<5x16xf32>
    %338 = vector.extract_strided_slice %154 {offsets = [0, 0], sizes = [5, 32], strides = [1, 1]} : vector<7x32xf32> to vector<5x32xf32>
    %c3_175 = arith.constant 3 : index
    %c0_176 = arith.constant 0 : index
    %c0_177 = arith.constant 0 : index
    %339 = vector.load %arg5[%c3_175, %c0_176, %c0_177] : memref<9x32x16xf32, #tpu.memory_space<vmem>>, vector<1x32x16xf32>
    %340 = vector.shape_cast %339 : vector<1x32x16xf32> to vector<32x16xf32>
    %cst_178 = arith.constant dense<0.000000e+00> : vector<5x16xf32>
    %341 = tpu.matmul %338, %340, %cst_178 {dimension_numbers = #tpu.dot_dimension_numbers<[1], [0], [0], [1], [0, 0, 1, 1], [], []>} : vector<5x32xf32>, vector<32x16xf32>, vector<5x16xf32> -> vector<5x16xf32>
    %342 = arith.addf %337, %341 : vector<5x16xf32>
    %343 = vector.extract_strided_slice %154 {offsets = [1, 0], sizes = [5, 32], strides = [1, 1]} : vector<7x32xf32> to vector<5x32xf32>
    %c4_179 = arith.constant 4 : index
    %c0_180 = arith.constant 0 : index
    %c0_181 = arith.constant 0 : index
    %344 = vector.load %arg5[%c4_179, %c0_180, %c0_181] : memref<9x32x16xf32, #tpu.memory_space<vmem>>, vector<1x32x16xf32>
    %345 = vector.shape_cast %344 : vector<1x32x16xf32> to vector<32x16xf32>
    %cst_182 = arith.constant dense<0.000000e+00> : vector<5x16xf32>
    %346 = tpu.matmul %343, %345, %cst_182 {dimension_numbers = #tpu.dot_dimension_numbers<[1], [0], [0], [1], [0, 0, 1, 1], [], []>} : vector<5x32xf32>, vector<32x16xf32>, vector<5x16xf32> -> vector<5x16xf32>
    %347 = arith.addf %342, %346 : vector<5x16xf32>
    %348 = vector.extract_strided_slice %154 {offsets = [2, 0], sizes = [5, 32], strides = [1, 1]} : vector<7x32xf32> to vector<5x32xf32>
    %c5_183 = arith.constant 5 : index
    %c0_184 = arith.constant 0 : index
    %c0_185 = arith.constant 0 : index
    %349 = vector.load %arg5[%c5_183, %c0_184, %c0_185] : memref<9x32x16xf32, #tpu.memory_space<vmem>>, vector<1x32x16xf32>
    %350 = vector.shape_cast %349 : vector<1x32x16xf32> to vector<32x16xf32>
    %cst_186 = arith.constant dense<0.000000e+00> : vector<5x16xf32>
    %351 = tpu.matmul %348, %350, %cst_186 {dimension_numbers = #tpu.dot_dimension_numbers<[1], [0], [0], [1], [0, 0, 1, 1], [], []>} : vector<5x32xf32>, vector<32x16xf32>, vector<5x16xf32> -> vector<5x16xf32>
    %352 = arith.addf %347, %351 : vector<5x16xf32>
    %353 = vector.extract_strided_slice %159 {offsets = [0, 0], sizes = [5, 32], strides = [1, 1]} : vector<7x32xf32> to vector<5x32xf32>
    %c6_187 = arith.constant 6 : index
    %c0_188 = arith.constant 0 : index
    %c0_189 = arith.constant 0 : index
    %354 = vector.load %arg5[%c6_187, %c0_188, %c0_189] : memref<9x32x16xf32, #tpu.memory_space<vmem>>, vector<1x32x16xf32>
    %355 = vector.shape_cast %354 : vector<1x32x16xf32> to vector<32x16xf32>
    %cst_190 = arith.constant dense<0.000000e+00> : vector<5x16xf32>
    %356 = tpu.matmul %353, %355, %cst_190 {dimension_numbers = #tpu.dot_dimension_numbers<[1], [0], [0], [1], [0, 0, 1, 1], [], []>} : vector<5x32xf32>, vector<32x16xf32>, vector<5x16xf32> -> vector<5x16xf32>
    %357 = arith.addf %352, %356 : vector<5x16xf32>
    %358 = vector.extract_strided_slice %159 {offsets = [1, 0], sizes = [5, 32], strides = [1, 1]} : vector<7x32xf32> to vector<5x32xf32>
    %c7_191 = arith.constant 7 : index
    %c0_192 = arith.constant 0 : index
    %c0_193 = arith.constant 0 : index
    %359 = vector.load %arg5[%c7_191, %c0_192, %c0_193] : memref<9x32x16xf32, #tpu.memory_space<vmem>>, vector<1x32x16xf32>
    %360 = vector.shape_cast %359 : vector<1x32x16xf32> to vector<32x16xf32>
    %cst_194 = arith.constant dense<0.000000e+00> : vector<5x16xf32>
    %361 = tpu.matmul %358, %360, %cst_194 {dimension_numbers = #tpu.dot_dimension_numbers<[1], [0], [0], [1], [0, 0, 1, 1], [], []>} : vector<5x32xf32>, vector<32x16xf32>, vector<5x16xf32> -> vector<5x16xf32>
    %362 = arith.addf %357, %361 : vector<5x16xf32>
    %363 = vector.extract_strided_slice %159 {offsets = [2, 0], sizes = [5, 32], strides = [1, 1]} : vector<7x32xf32> to vector<5x32xf32>
    %c8_195 = arith.constant 8 : index
    %c0_196 = arith.constant 0 : index
    %c0_197 = arith.constant 0 : index
    %364 = vector.load %arg5[%c8_195, %c0_196, %c0_197] : memref<9x32x16xf32, #tpu.memory_space<vmem>>, vector<1x32x16xf32>
    %365 = vector.shape_cast %364 : vector<1x32x16xf32> to vector<32x16xf32>
    %cst_198 = arith.constant dense<0.000000e+00> : vector<5x16xf32>
    %366 = tpu.matmul %363, %365, %cst_198 {dimension_numbers = #tpu.dot_dimension_numbers<[1], [0], [0], [1], [0, 0, 1, 1], [], []>} : vector<5x32xf32>, vector<32x16xf32>, vector<5x16xf32> -> vector<5x16xf32>
    %367 = arith.addf %362, %366 : vector<5x16xf32>
    %cst_199 = arith.constant 0.000000e+00 : f32
    %368 = vector.broadcast %cst_199 : f32 to vector<5x16xf32>
    %369 = arith.cmpf ogt, %367, %368 : vector<5x16xf32>
    %cst_200 = arith.constant 1.000000e-01 : f32
    %370 = vector.broadcast %cst_200 : f32 to vector<5x16xf32>
    %371 = arith.mulf %370, %367 : vector<5x16xf32>
    %372 = arith.select %369, %367, %371 : vector<5x16xi1>, vector<5x16xf32>
    %cst_201 = arith.constant 0.000000e+00 : f32
    %373 = vector.broadcast %cst_201 : f32 to vector<1x16xf32>
    %374 = arith.maximumf %213, %266 : vector<5x16xf32>
    %cst_202 = arith.constant dense<0.000000e+00> : vector<16xf32>
    %375 = vector.multi_reduction <add>, %374, %cst_202 [0] : vector<5x16xf32> to vector<16xf32>
    %376 = vector.shape_cast %375 : vector<16xf32> to vector<1x16xf32>
    %377 = arith.addf %373, %376 : vector<1x16xf32>
    %378 = arith.maximumf %319, %372 : vector<5x16xf32>
    %cst_203 = arith.constant dense<0.000000e+00> : vector<16xf32>
    %379 = vector.multi_reduction <add>, %378, %cst_203 [0] : vector<5x16xf32> to vector<16xf32>
    %380 = vector.shape_cast %379 : vector<16xf32> to vector<1x16xf32>
    %381 = arith.addf %377, %380 : vector<1x16xf32>
    %cst_204 = arith.constant 1.000000e-01 : f32
    %382 = vector.broadcast %cst_204 : f32 to vector<1x16xf32>
    %383 = arith.mulf %381, %382 : vector<1x16xf32>
    %c0_205 = arith.constant 0 : index
    %c0_206 = arith.constant 0 : index
    %c0_207 = arith.constant 0 : index
    %384 = vector.load %arg7[%c0_205, %c0_206, %c0_207] : memref<1x1x16xf32, #tpu.memory_space<vmem>>, vector<1x1x16xf32>
    %385 = vector.shape_cast %384 : vector<1x1x16xf32> to vector<1x16xf32>
    %386 = vector.shape_cast %383 : vector<1x16xf32> to vector<1x1x16xf32>
    tpu.vector_store %arg7[%c0_205, %c0_206, %c0_207], %386 {strides = array<i32>} : memref<1x1x16xf32, #tpu.memory_space<vmem>>, vector<1x1x16xf32>,
    return
  }
  func.func @transform_0(%arg0: i32) -> (i32, i32, i32, i32) {
    %c0_i32 = arith.constant 0 : i32
    %c0_i32_0 = arith.constant 0 : i32
    %c0_i32_1 = arith.constant 0 : i32
    %c0_i32_2 = arith.constant 0 : i32
    return %arg0, %c0_i32, %c0_i32_0, %c0_i32_1 : i32, i32, i32, i32
  }
  func.func @transform_1(%arg0: i32) -> (i32, i32, i32, i32) {
    %c0_i32 = arith.constant 0 : i32
    %c0_i32_0 = arith.constant 0 : i32
    %c0_i32_1 = arith.constant 0 : i32
    %c0_i32_2 = arith.constant 0 : i32
    return %arg0, %c0_i32, %c0_i32_0, %c0_i32_1 : i32, i32, i32, i32
  }
  func.func @transform_2(%arg0: i32) -> (i32, i32, i32, i32) {
    %c0_i32 = arith.constant 0 : i32
    %c0_i32_0 = arith.constant 0 : i32
    %c0_i32_1 = arith.constant 0 : i32
    %c0_i32_2 = arith.constant 0 : i32
    %c0_i32_3 = arith.constant 0 : i32
    return %c0_i32, %c0_i32_0, %c0_i32_1, %c0_i32_2 : i32, i32, i32, i32
  }
  func.func @transform_3(%arg0: i32) -> (i32, i32, i32) {
    %c0_i32 = arith.constant 0 : i32
    %c0_i32_0 = arith.constant 0 : i32
    %c0_i32_1 = arith.constant 0 : i32
    %c0_i32_2 = arith.constant 0 : i32
    return %c0_i32, %c0_i32_0, %c0_i32_1 : i32, i32, i32
  }
  func.func @transform_4(%arg0: i32) -> (i32, i32, i32) {
    %c0_i32 = arith.constant 0 : i32
    %c0_i32_0 = arith.constant 0 : i32
    %c0_i32_1 = arith.constant 0 : i32
    %c0_i32_2 = arith.constant 0 : i32
    return %c0_i32, %c0_i32_0, %c0_i32_1 : i32, i32, i32
  }
  func.func @transform_5(%arg0: i32) -> (i32, i32) {
    %c0_i32 = arith.constant 0 : i32
    %c0_i32_0 = arith.constant 0 : i32
    %c0_i32_1 = arith.constant 0 : i32
    return %c0_i32, %c0_i32_0 : i32, i32
  }
  func.func @transform_6(%arg0: i32) -> (i32, i32, i32) {
    %c0_i32 = arith.constant 0 : i32
    %c0_i32_0 = arith.constant 0 : i32
    %c0_i32_1 = arith.constant 0 : i32
    return %arg0, %c0_i32, %c0_i32_0 : i32, i32, i32
  }
}

</mosaic_0001>

<bundles_post_ra>
// kernel: feature_extractor_forward.1
= control target key start
LH: loop header
LB: loop body
LE: loop exit
PB: predicated region body
PF: predicated region fallthrough
CT: control target
= control target key end

     0   :  { %11 = vsyncpa [#allocation3], 0  ;;  %s6530_s0 = inlined_call_operand.vmem [shape: f32[2,16,8,1], index: 0, kind: input, shape index: {}]   ;;  %s6531_s1 = inlined_call_operand.vmem [shape: f32[2,16,8,1], index: 1, kind: input, shape index: {}]   ;;  %s6532_s2 = inlined_call_operand.vmem [shape: f32[9,1,1,32], index: 2, kind: input, shape index: {}]   ;;  %s6533_s3 = inlined_call_operand.vmem [shape: f32[1,1,32], index: 3, kind: input, shape index: {}]   ;;  %s6534_s4 = inlined_call_operand.vmem [shape: f32[9,32,16], index: 4, kind: input, shape index: {}]   ;;  %s6535_s5 = inlined_call_operand.vmem [shape: f32[1,16], index: 5, kind: input, shape index: {}]   ;;  %s6536_s6 = inlined_call_operand.hbm [shape: f32[2,1,16], index: 6, kind: output, shape index: {}]  }
   0x1   :  { %13 = vsyncpa [#allocation3 + $0x1], 0  ;;  %s5281_s21 = smov 0   ;;  %s5283_s22 = smov 0  }
   0x2   :  { %s5285_s23 = smov 0   ;;  %s5287_s24 = smov 0  }
   0x3 LB: > { %s5302_s25 = sadd.s32 4294967295, %s5239_s24   ;;  %s4162_s26 = sadd.s32 4294967294, %s5239_s24   ;;  %s5239_s24 = sphi %s5287_s24, %s6542_s24   ;;  %s5235_s23 = sphi %s5285_s23, %s6541_s23   ;;  %s5231_s22 = sphi %s5283_s22, %s6540_s22   ;;  %s5227_s21 = sphi %s5281_s21, %s6539_s21  }
   0x4   : > { %s5306_s27 = sadd.s32 1, %s5239_s24   ;;  %s162_s28 = sadd.s32 1, %s5235_s23 }
   0x5   : > { %s159_s29 = ssub.s32 %s5239_s24, %s5306_s27  ;;  %p172_p0 = scmp.ne.s32.totalorder %s5235_s23, %s5231_s22 }
   0x6   : > { %p160_p1 = scmp.eq.s32.totalorder %s159_s29, 0  ;;  %p173_p2 = scmp.eq.s32.totalorder %s5302_s25, 1 }
   0x7   : > { %p178_p3 = scmp.ne.s32.totalorder %s5231_s22, %s5227_s21  ;;  %p179_p4 = scmp.eq.s32.totalorder %s4162_s26, 1 }
   0x8   : > { %s5317_s30 = scalar_select %p160_p1, %s5235_s23, %s162_s28  }
   0x9   : > { %p5319_p5 = por %p173_p2, %p172_p0  ;;  %p5323_p6 = por %p179_p4, %p178_p3 }
   0xa   : > { %p4165_p7 = scmp.ge.s32.totalorder %s5239_s24, 1  ;;  %p225_p8 = scmp.lt.s32.totalorder %s5239_s24, 3 }
   0xc   : > { %p226_p9 = pnand %p4165_p7, %p225_p8 }
   0xd   : > { %p259_p10 = scmp.lt.s32.totalorder (!%p226_p9), %s5302_s25, 1  ;;  %v5241_v0 = vmov (!%p226_p9), 0   ;;  %v1393_v23 = vld [vmem:[%s6534_s4] sm:$0xff] (!%p226_p9)  ;;  %v1394_v24 = vld [vmem:[%s6534_s4 + $0x8] sm:$0xff] (!%p226_p9)  ;;  %v5242_v28 = vmov (!%p226_p9), 0.0|0.0   ;;  %v1395_v31 = vld [vmem:[%s6534_s4 + $0x10] sm:$0xff] (!%p226_p9) }
   0xe   : > { %229 = sbr.rel (%p226_p9) target bundleno = 620 (0x26c), region = 44  ;;  %5166 = vset.pattern.permute.xlu1 (!%p226_p9), %v5241_v0  ;;  %5165 = vset.pattern.permute.xlu0 (!%p226_p9), %v5241_v0  ;;  %v5369_v25 = vpack.c.bf16 (!%p226_p9), %v1394_v24, %v1393_v23  ;;  %v1396_v32 = vld [vmem:[%s6534_s4 + $0x18] sm:$0xff] (!%p226_p9)  ;;  %vm5243_vm0 = vmmov (!%p226_p9), 0   ;;  %v5244_v36 = vmov (!%p226_p9), 0.0   ;;  %v5404_v41 = vld [vmem:[%s6532_s2 + $0x1] ss:$0 sm:$0xff] (!%p226_p9) }
   0xf   : > { %4838 = vmatprep.subr.bf16.mxu0 (!%p226_p9), %v5242_v28  ;;  %4892 = vmatprep.subr.bf16.mxu1 (!%p226_p9), %v5242_v28  ;;  %v5387_v33 = vpack.c.bf16 (!%p226_p9), %v1396_v32, %v1395_v31  ;;  %v5409_v42 = vld [vmem:[%s6532_s2] ss:$0 sm:$0xff] (!%p226_p9)  ;;  %v5414_v43 = vld [vmem:[%s6532_s2 + $0x2] ss:$0 sm:$0xff] (!%p226_p9)  ;;  %v5431_v62 = vld [vmem:[%s6532_s2 + $0x3] ss:$0 sm:$0xff] (!%p226_p9) }
  0x10   : > { %4840 = vmatpush3.bf16.msra.mxu0 (!%p226_p9), %v5369_v25  ;;  %4894 = vmatpush3.bf16.msra.mxu1 (!%p226_p9), %v5369_v25  ;;  %vm1397_vm1 = vcmask (!%p226_p9), 261120   ;;  %s257_s11 = sand.u32 (!%p226_p9), 1, %s5231_s22   ;;  %s4257_s12 = sshll.u32 (!%p226_p9), %s5302_s25, 4 }
  0x11   : > { %4841 = vmatprep.subr.bf16.mxu0 (!%p226_p9), %v5242_v28  ;;  %4895 = vmatprep.subr.bf16.mxu1 (!%p226_p9), %v5242_v28  ;;  %s6488_s17 = scalar_lea.hbm (!%p226_p9), %s6536_s6, %s4257_s12  ;;  %s4083_s18 = scalar_lea.sflag (!%p226_p9), [#allocation3], %s257_s11 }
  0x12   : > { %4450 = vmatprep.mubr.msk.f32.mxu0 (!%p226_p9), %vm5243_vm0, %v5244_v36  ;;  %4549 = vmatprep.mubr.msk.f32.mxu1 (!%p226_p9), %vm5243_vm0, %v5244_v36 }
  0x14   : > { %4843 = vmatpush3.bf16.msra.mxu0 (!%p226_p9), %v5387_v33  ;;  %4897 = vmatpush3.bf16.msra.mxu1 (!%p226_p9), %v5387_v33 }
  0x15   : > { %s260_s9 = scalar_select %p259_p10, %s5302_s25, 1  ;;  %4844 = vmatprep.subr.bf16.mxu0 %v5242_v28  ;;  %4898 = vmatprep.subr.bf16.mxu1 %v5242_v28 }
  0x16   : > { %s5245_s25 = smov [#allocation2]  }
  0x17   : > { %s4260_s10 = sshll.u32 %s260_s9, 7  ;;  %s5181_s20 = sshll.u32 %s5245_s25, 4  ;;  %s5182_s20 = int_to_ptr.vmem [resolvable:$false] %s5181_s20 }
  0x18   : > { %s5334_s13 = scalar_lea.vmem %s6530_s0, %s4260_s10  ;;  %s5343_s16 = scalar_lea.vmem %s6531_s1, %s4260_s10 }
  0x19   : > { %v271_v1 = vld [vmem:[%s5334_s13 + $0x10] sm:$0xff]  ;;  %v269_v2 = vld [vmem:[%s5334_s13] sm:$0xff]  ;;  %v272_v3 = vld [vmem:[%s5334_s13 + $0x18] sm:$0xff]  ;;  %s5183_s26 = scalar_lea.vmem %s5182_s20, 32 }
  0x1a   : > { %310 = vperm.xlu1 %5166, %v271_v1   ;;  %300 = vperm.xlu0 %5165, %v269_v2   ;;  %v270_v4 = vld [vmem:[%s5334_s13 + $0x8] sm:$0xff]  ;;  %v283_v6 = vld [vmem:[%s5343_s16] sm:$0xff]  ;;  %v286_v7 = vld [vmem:[%s5343_s16 + $0x18] sm:$0xff] }
  0x1b   : > { %v284_v5 = vld [vmem:[%s5343_s16 + $0x8] sm:$0xff]  ;;  %v285_v8 = vld [vmem:[%s5343_s16 + $0x10] sm:$0xff]  ;;  %v287_v9 = vld [vmem:[%s5343_s16 + $0x20] sm:$0xff] }
  0x1c   : > { %v273_v10 = vld [vmem:[%s5334_s13 + $0x20] sm:$0xff]  ;;  %v288_v11 = vld [vmem:[%s5343_s16 + $0x28] sm:$0xff]  ;;  %v289_v13 = vld [vmem:[%s5343_s16 + $0x30] sm:$0xff] }
  0x1d   : > { %v274_v12 = vld [vmem:[%s5334_s13 + $0x28] sm:$0xff]  ;;  %v275_v14 = vld [vmem:[%s5334_s13 + $0x30] sm:$0xff]  ;;  %v290_v15 = vld [vmem:[%s5343_s16 + $0x38] sm:$0xff] }
  0x1e   : > { %315 = vperm.xlu1 %5166, %v272_v3   ;;  %305 = vperm.xlu0 %5165, %v270_v4   ;;  %v276_v16 = vld [vmem:[%s5334_s13 + $0x38] sm:$0xff]  ;;  %v291_v17 = vld [vmem:[%s5343_s16 + $0x40] sm:$0xff]  ;;  %v292_v19 = vld [vmem:[%s5343_s16 + $0x48] sm:$0xff] }
  0x1f   : > { %v277_v18 = vld [vmem:[%s5334_s13 + $0x40] sm:$0xff]  ;;  %v278_v20 = vld [vmem:[%s5334_s13 + $0x48] sm:$0xff]  ;;  %v293_v21 = vld [vmem:[%s5343_s16 + $0x50] sm:$0xff] }
  0x20   : > { %v279_v22 = vld [vmem:[%s5334_s13 + $0x50] sm:$0xff]  ;;  %v294_v26 = vld [vmem:[%s5343_s16 + $0x58] sm:$0xff]  ;;  %v295_v29 = vld [vmem:[%s5343_s16 + $0x60] sm:$0xff] }
  0x21   : > { %v280_v27 = vld [vmem:[%s5334_s13 + $0x58] sm:$0xff]  ;;  %v281_v30 = vld [vmem:[%s5334_s13 + $0x60] sm:$0xff]  ;;  %v296_v34 = vld [vmem:[%s5343_s16 + $0x68] sm:$0xff] }
  0x22   : > { %395 = vperm.xlu1 %5166, %v284_v5   ;;  %390 = vperm.xlu0 %5165, %v283_v6   ;;  %v282_v35 = vld [vmem:[%s5334_s13 + $0x68] sm:$0xff]  ;;  %v4190_v3 = vld [vmem:[%s6534_s4 + $0x20] sm:$0xff]  ;;  %s258_s13 = scalar_lea.vmem [#allocation2], %s257_s11 }
  0x23   : > { %v4191_v4 = vld [vmem:[%s6534_s4 + $0x28] sm:$0xff]  ;;  %v5445_v6 = vld [vmem:[%s6532_s2 + $0x4] ss:$0 sm:$0xff]  ;;  %s4095_s14 = sshll.u32 %s258_s13, 4  ;;  %s6490_s14 = int_to_ptr.vmem [resolvable:$true] %s4095_s14 }
  0x24   : > { %s5177_s19 = scalar_lea.vmem %s6490_s14, 16  ;;  %p5184_p0 = scmp.lt.s32.totalorder %s6490_s14, %s5182_s20 }
  0x25   : > { %p5178_p11 = scmp.ne.s32.totalorder %s6490_s14, %s5177_s19  ;;  %p5185_p1 = scmp.lt.s32.totalorder %s5183_s26, %s5177_s19 }
  0x26   : > { %405 = vperm.xlu1 %5166, %v286_v7   ;;  %400 = vperm.xlu0 %5165, %v285_v8  }
  0x27   : > { %p5179_p12 = pnand %p5178_p11, %p5319_p5  ;;  %p5186_p2 = por %p5185_p1, %p5184_p0 }
  0x29   : > { %p5180_p13 = pneg %p5179_p12 }
  0x2a   : > { %410 = vperm.xlu1 %5166, %v287_v9   ;;  %320 = vperm.xlu0 %5165, %v273_v10  }
  0x2b   : > { %p5187_p3 = pnand %p5186_p2, %p5180_p13 }
  0x2e   : > { %415 = vperm.xlu1 %5166, %v288_v11   ;;  %325 = vperm.xlu0 %5165, %v274_v12   ;;  %v5450_v11 = vld [vmem:[%s6532_s2 + $0x5] ss:$0 sm:$0xff] }
  0x32   : > { %420 = vperm.xlu1 %5166, %v289_v13   ;;  %330 = vperm.xlu0 %5165, %v275_v14  }
  0x36   : > { %425 = vperm.xlu1 %5166, %v290_v15   ;;  %335 = vperm.xlu0 %5165, %v276_v16   ;;  %v5460_v16 = vpack.c.bf16 %v4191_v4, %v4190_v3 }
  0x3a   : > { %430 = vperm.xlu1 %5166, %v291_v17   ;;  %340 = vperm.xlu0 %5165, %v277_v18  }
  0x3e   : > { %435 = vperm.xlu1 %5166, %v292_v19   ;;  %345 = vperm.xlu0 %5165, %v278_v20  }
  0x42   : > { %440 = vperm.xlu1 %5166, %v293_v21   ;;  %350 = vperm.xlu0 %5165, %v279_v22  }
  0x46   : > { %445 = vperm.xlu1 %5166, %v294_v26   ;;  %355 = vperm.xlu0 %5165, %v280_v27  }
  0x4a   : > { %731 = vperm.xlu1 %5166, %v295_v29   ;;  %696 = vperm.xlu0 %5165, %v281_v30   ;;  %v5481_v30 = vld [vmem:[%s6532_s2 + $0x6] ss:$0 sm:$0xff] }
  0x4e   : > { %1017 = vperm.xlu1 %5166, %v296_v34   ;;  %982 = vperm.xlu0 %5165, %v282_v35  }
  0x99   : > { %v301_v37 = vpop.permute.xlu0 %300  ;;  %v5399_v39 = vpop.permute.xlu1 %310 }
  0x9a   : > { %v504_v46 = vmul.f32 %v5404_v41, %v301_v37  ;;  %v364_v47 = vmul.f32 %v5409_v42, %v301_v37  ;;  %v572_v48 = vmul.f32 %v5414_v43, %v301_v37  ;;  %v5454_v12 = vmul.f32 %v5404_v41, %v5399_v39 }
  0x9b   : > { %v5464_v17 = vmul.f32 %v5414_v43, %v5399_v39  ;;  %v5470_v21 = vmul.f32 %v5409_v42, %v5399_v39  ;;  %v791_v22 = vmul.f32 %v5445_v6, %v5399_v39  ;;  %v859_v35 = vmul.f32 %v5450_v11, %v5399_v39 }
  0x9c   : > { %v528_v52 = vrot.slane %v504_v46, 1  ;;  %v596_v54 = vrot.slane %v572_v48, 1  ;;  %v530_v34 = vrot.slane %v5454_v12, 1  ;;  %v706_v46 = vmul.f32 %v5431_v62, %v5399_v39 }
  0x9d   : > { %v306_v38 = vpop.permute.xlu0 %305  ;;  %v5416_v44 = vpop.permute.xlu1 %315  ;;  %v815_v48 = vrot.slane %v791_v22, 1 }
  0x9e   : > { %v505_v55 = vmul.f32 %v5404_v41, %v306_v38  ;;  %v365_v63 = vmul.f32 %v5409_v42, %v306_v38  ;;  %v573_v1 = vmul.f32 %v5414_v43, %v306_v38  ;;  %v705_v2 = vmul.f32 %v5431_v62, %v306_v38 }
  0x9f   : > { %v790_v13 = vmul.f32 %v5445_v6, %v306_v38  ;;  %v858_v19 = vmul.f32 %v5450_v11, %v306_v38  ;;  %v507_v23 = vmul.f32 %v5404_v41, %v5416_v44 }
  0xa0   : > { %v529_v0 = vrot.slane %v505_v55, 1  ;;  %v597_v18 = vrot.slane %v573_v1, 1 }
  0xa1   : > { %v391_v40 = vpop.permute.xlu0 %390  ;;  %v396_v53 = vpop.permute.xlu1 %395  ;;  %v814_v38 = vrot.slane %v790_v13, 1  ;;  %v5524_v13 = vld [vmem:[%s6532_s2 + $0x8] ss:$0 sm:$0xff] }
  0xa2   : > { %v480_v45 = vmul.f32 %v5404_v41, %v391_v40  ;;  %v448_v49 = vmul.f32 %v5409_v42, %v391_v40  ;;  %v632_v50 = vmul.f32 %v5414_v43, %v391_v40  ;;  %v449_v58 = vmul.f32 %v5409_v42, %v396_v53 }
  0xa3   : > { %v481_v59 = vmul.f32 %v5404_v41, %v396_v53  ;;  %v633_v60 = vmul.f32 %v5414_v43, %v396_v53  ;;  %v734_v14 = vmul.f32 %v5431_v62, %v396_v53  ;;  %v766_v20 = vmul.f32 %v5445_v6, %v396_v53 }
  0xa4   : > { %v492_v51 = vadd.f32 %v480_v45, %v364_v47  ;;  %v552_v56 = vadd.f32 %v528_v52, %v448_v49  ;;  %v656_v57 = vrot.slane %v632_v50, 1  ;;  %v553_v8 = vadd.f32 %v529_v0, %v449_v58 }
  0xa5   : > { %v493_v7 = vadd.f32 %v481_v59, %v365_v63  ;;  %v657_v9 = vrot.slane %v633_v60, 1  ;;  %v5458_v15 = vpop.permute.xlu0 %400  ;;  %v5476_v26 = vpop.permute.xlu1 %405  ;;  %v918_v37 = vmul.f32 %v5450_v11, %v396_v53  ;;  %v598_v40 = vrot.slane %v5464_v17, 1 }
  0xa6   : > { %v620_v61 = vadd.f32 %v596_v54, %v492_v51  ;;  %v680_v5 = vadd.f32 %v656_v57, %v552_v56  ;;  %v735_v32 = vmul.f32 %v5431_v62, %v5458_v15  ;;  %v882_v45 = vrot.slane %v858_v19, 1 }
  0xa7   : > { %v621_v27 = vadd.f32 %v597_v18, %v493_v7  ;;  %v681_v29 = vadd.f32 %v657_v9, %v553_v8  ;;  %v451_v47 = vmul.f32 %v5409_v42, %v5476_v26  ;;  %v991_v49 = vmul.f32 %v5481_v30, %v5399_v39 }
  0xa8   : > { %v717_v10 = vadd.f32 %v705_v2, %v620_v61  ;;  %v746_v24 = vadd.f32 %v734_v14, %v680_v5  ;;  %v635_v51 = vmul.f32 %v5414_v43, %v5476_v26  ;;  %v531_v52 = vrot.slane %v507_v23, 1  ;;  %v5515_v5 = vld [vmem:[%s6532_s2 + $0x7] ss:$0 sm:$0xff] }
  0xa9   : > { %v718_v53 = vadd.f32 %v706_v46, %v621_v27  ;;  %v747_v55 = vadd.f32 %v735_v32, %v681_v29  ;;  %v367_v56 = vmul.f32 %v5409_v42, %v5416_v44  ;;  %v942_v57 = vrot.slane %v918_v37, 1 }
  0xaa   : > { %v778_v31 = vadd.f32 %v766_v20, %v717_v10  ;;  %v838_v50 = vadd.f32 %v814_v38, %v746_v24  ;;  %v919_v58 = vmul.f32 %v5450_v11, %v5458_v15  ;;  %v883_v59 = vrot.slane %v859_v35, 1 }
  0xab   : > { %v575_v60 = vmul.f32 %v5414_v43, %v5416_v44  ;;  %v483_v61 = vmul.f32 %v5404_v41, %v5476_v26  ;;  %v555_v63 = vadd.f32 %v531_v52, %v451_v47  ;;  %v767_v0 = vmul.f32 %v5445_v6, %v5458_v15 }
  0xac   : > { %v906_v54 = vadd.f32 %v882_v45, %v778_v31  ;;  %v966_v1 = vadd.f32 %v942_v57, %v838_v50  ;;  %v659_v2 = vrot.slane %v635_v51, 1  ;;  %v450_v3 = vmul.f32 %v5409_v42, %v5458_v15  ;;  %v5553_v57 = vpop.permute.xlu1 %410 }
  0xad   : > { %v482_v4 = vmul.f32 %v5404_v41, %v5458_v15  ;;  %v5519_v8 = vmul.f32 %v5414_v43, %v5458_v15  ;;  %v779_v9 = vadd.f32 %v767_v0, %v718_v53  ;;  %v839_v10 = vadd.f32 %v815_v48, %v747_v55 }
  0xae   : > { %v1003_v7 = vadd.f32 %v991_v49, %v906_v54  ;;  %v943_v14 = vrot.slane %v919_v58, 1  ;;  %v992_v18 = vmul.f32 %v5481_v30, %v5416_v44  ;;  %v1020_v19 = vmul.f32 %v5481_v30, %v5458_v15 }
  0xaf   : > { %v1021_v20 = vmul.f32 %v5481_v30, %v5476_v26  ;;  %v907_v22 = vadd.f32 %v883_v59, %v779_v9  ;;  %v1052_v23 = vmul.f32 %v5515_v5, %v5458_v15  ;;  %v1053_v24 = vmul.f32 %v5515_v5, %v5476_v26 }
  0xb0   : > { %v1076_v27 = vmul.f32 %v5515_v5, %v5399_v39  ;;  %v967_v29 = vadd.f32 %v943_v14, %v839_v10  ;;  %v1032_v31 = vadd.f32 %v1020_v19, %v966_v1  ;;  %v1077_v32 = vmul.f32 %v5515_v5, %v5416_v44 }
  0xb1   : > { %v1144_v35 = vmul.f32 %v5524_v13, %v5399_v39  ;;  %v1004_v37 = vadd.f32 %v992_v18, %v907_v22  ;;  %v1064_v38 = vadd.f32 %v1052_v23, %v1003_v7  ;;  %v1145_v46 = vmul.f32 %v5524_v13, %v5416_v44  ;;  %v5551_v39 = vld [vmem:[%s6533_s3] ss:$0 sm:$0xff]  ;;  %v5558_v18 = vpop.permute.xlu0 %320 }
  0xb2   : > { %v1100_v45 = vrot.slane %v1076_v27, 1  ;;  %v1033_v47 = vadd.f32 %v1021_v20, %v967_v29  ;;  %v1101_v48 = vrot.slane %v1077_v32, 1  ;;  %v1204_v50 = vmul.f32 %v5524_v13, %v5458_v15 }
  0xb3   : > { %v1168_v49 = vrot.slane %v1144_v35, 1  ;;  %v1065_v51 = vadd.f32 %v1053_v24, %v1004_v37  ;;  %v1169_v53 = vrot.slane %v1145_v46, 1  ;;  %v1205_v54 = vmul.f32 %v5524_v13, %v5476_v26 }
  0xb4   : > { %v1124_v52 = vadd.f32 %v1100_v45, %v1032_v31  ;;  %v495_v55 = vadd.f32 %v483_v61, %v367_v56  ;;  %v1125_v58 = vadd.f32 %v1101_v48, %v1033_v47  ;;  %v1228_v0 = vrot.slane %v1204_v50, 1 }
  0xb5   : > { %v1192_v59 = vadd.f32 %v1168_v49, %v1064_v38  ;;  %v599_v1 = vrot.slane %v575_v60, 1  ;;  %v683_v7 = vadd.f32 %v659_v2, %v555_v63  ;;  %v1193_v15 = vadd.f32 %v1169_v53, %v1065_v51 }
  0xb6   : > { %v1229_v9 = vrot.slane %v1205_v54, 1  ;;  %v494_v10 = vadd.f32 %v482_v4, %v5470_v21  ;;  %v554_v14 = vadd.f32 %v530_v34, %v450_v3  ;;  %v1252_v19 = vadd.f32 %v1228_v0, %v1124_v52  ;;  %v4192_v4 = vld [vmem:[%s6534_s4 + $0x30] sm:$0xff] }
  0xb7   : > { %v1271_v20 = vadd.f32 %v5551_v39, %v1192_v59  ;;  %v658_v56 = vrot.slane %v5519_v8, 1  ;;  %v737_v61 = vmul.f32 %v5431_v62, %v5553_v57  ;;  %v1272_v60 = vadd.f32 %v5551_v39, %v1193_v15  ;;  %v4193_v8 = vld [vmem:[%s6534_s4 + $0x38] sm:$0xff] }
  0xb8   : > { %v1253_v22 = vadd.f32 %v1229_v9, %v1125_v58  ;;  %v623_v63 = vadd.f32 %v599_v1, %v495_v55  ;;  %v1319_v12 = vadd.f32 %v5551_v39, %v1252_v19  ;;  %v708_v34 = vmul.f32 %v5431_v62, %v5558_v18  ;;  %v5609_v9 = vpop.permute.xlu0 %325 }
  0xb9   : > { %vm1283_vm2 = vcmp.gt.f32.partialorder %v1271_v20, 0.0  ;;  %v1295_v21 = vmul.f32 0.1, %v1271_v20  ;;  %vm1284_vm3 = vcmp.gt.f32.partialorder %v1272_v60, 0.0  ;;  %v1296_v2 = vmul.f32 0.1, %v1272_v60 }
  0xba   : > { %v1320_v3 = vadd.f32 %v5551_v39, %v1253_v22  ;;  %v793_v23 = vmul.f32 %v5445_v6, %v5558_v18  ;;  %vm1331_vm4 = vcmp.gt.f32.partialorder %v1319_v12, 0.0  ;;  %v1343_v27 = vmul.f32 0.1, %v1319_v12 }
  0xbb   : > { %v1307_v24 = vsel %vm1283_vm2, %v1271_v20, %v1295_v21  ;;  %v792_v29 = vmul.f32 %v5445_v6, %v5416_v44  ;;  %v1308_v31 = vsel %vm1284_vm3, %v1272_v60, %v1296_v2  ;;  %v707_v35 = vmul.f32 %v5431_v62, %v5416_v44 }
  0xbc   : > { %vm1332_vm5 = vcmp.gt.f32.partialorder %v1320_v3, 0.0  ;;  %v1344_v32 = vmul.f32 0.1, %v1320_v3  ;;  %v860_v37 = vmul.f32 %v5450_v11, %v5416_v44  ;;  %v1355_v38 = vsel %vm1331_vm4, %v1319_v12, %v1343_v27 }
  0xbd   : > { %v5583_v45 = vpack.c.bf16 %v4193_v8, %v4192_v4  ;;  %v622_v46 = vadd.f32 %v598_v40, %v494_v10  ;;  %v682_v47 = vadd.f32 %v658_v56, %v554_v14  ;;  %v1367_v49 = vmax.f32 %v1307_v24, %v1355_v38  ;;  %v5615_v14 = vpop.permute.xlu1 %415 }
  0xbe   : > { %v1356_v48 = vsel %vm1332_vm5, %v1320_v3, %v1344_v32  ;;  %v749_v50 = vadd.f32 %v737_v61, %v683_v7  ;;  %v720_v51 = vadd.f32 %v708_v34, %v623_v63  ;;  %v817_v52 = vrot.slane %v793_v23, 1 }
  0xbf   : > { %v1368_v53 = vmax.f32 %v1308_v31, %v1356_v48  ;;  %v816_v54 = vrot.slane %v792_v29, 1  ;;  %v736_v55 = vmul.f32 %v5431_v62, %v5476_v26  ;;  %v920_v44 = vmul.f32 %v5450_v11, %v5476_v26 }
  0xc0   : > { %v861_v58 = vmul.f32 %v5450_v11, %v5558_v18  ;;  %v768_v17 = vmul.f32 %v5445_v6, %v5476_v26  ;;  %v769_v40 = vmul.f32 %v5445_v6, %v5553_v57  ;;  %v921_v59 = vmul.f32 %v5450_v11, %v5553_v57 }
  0xc1   : > { %v5599_v0 = vmax.f32 %v1367_v49, %v1368_v53  ;;  %v484_v1 = vmul.f32 %v5404_v41, %v5553_v57  ;;  %v368_v7 = vmul.f32 %v5409_v42, %v5558_v18  ;;  %v5607_v15 = vmul.f32 %v5404_v41, %v5558_v18 }
  0xc2   : > { %v719_v26 = vadd.f32 %v707_v35, %v622_v46  ;;  %v5613_v10 = vmul.f32 %v5414_v43, %v5558_v18  ;;  %v748_v19 = vadd.f32 %v736_v55, %v682_v47  ;;  %v781_v20 = vadd.f32 %v769_v40, %v720_v51 }
  0xc3   : > { %4451 = vmatmul.mubr.msk.f32.vlgmr.msra.gmra.mrb[0].mxu0 %vm1397_vm1, %v5599_v0  ;;  %v841_v56 = vadd.f32 %v817_v52, %v749_v50  ;;  %v884_v22 = vrot.slane %v860_v37, 1  ;;  %v885_v60 = vrot.slane %v861_v58, 1  ;;  %v944_v63 = vrot.slane %v920_v44, 1 }
  0xc4   : > { %4846 = vmatpush3.bf16.msra.mxu0 %v5460_v16  ;;  %v780_v61 = vadd.f32 %v768_v17, %v719_v26  ;;  %4461 = vmatprep.mubr.msk.f32.mxu0 %vm5243_vm0, %v5244_v36  ;;  %v840_v21 = vadd.f32 %v816_v54, %v748_v19  ;;  %v945_v12 = vrot.slane %v921_v59, 1  ;;  %v993_v34 = vmul.f32 %v5481_v30, %v5558_v18  ;;  %v4196_v17 = vld [vmem:[%s6534_s4 + $0x48] sm:$0xff] }
  0xc5   : > { %4847 = vmatprep.subr.bf16.mxu0 %v5242_v28  ;;  %v994_v2 = vmul.f32 %v5481_v30, %v5609_v9  ;;  %v909_v4 = vadd.f32 %v885_v60, %v781_v20  ;;  %v1022_v8 = vmul.f32 %v5481_v30, %v5553_v57  ;;  %v1023_v23 = vmul.f32 %v5481_v30, %v5615_v14 }
  0xc6   : > { %v908_v3 = vadd.f32 %v884_v22, %v780_v61  ;;  %v968_v24 = vadd.f32 %v944_v63, %v840_v21  ;;  %v969_v27 = vadd.f32 %v945_v12, %v841_v56  ;;  %v1054_v29 = vmul.f32 %v5515_v5, %v5553_v57 }
  0xc7   : > { %v1055_v31 = vmul.f32 %v5515_v5, %v5615_v14  ;;  %v1006_v35 = vadd.f32 %v994_v2, %v909_v4  ;;  %v1078_v37 = vmul.f32 %v5515_v5, %v5558_v18  ;;  %v1079_v38 = vmul.f32 %v5515_v5, %v5609_v9 }
  0xc8   : > { %4849 = vmatpush3.bf16.msra.mxu0 %v5583_v45  ;;  %v1005_v32 = vadd.f32 %v993_v34, %v908_v3  ;;  %v1034_v46 = vadd.f32 %v1022_v8, %v968_v24  ;;  %v1035_v47 = vadd.f32 %v1023_v23, %v969_v27  ;;  %v1146_v48 = vmul.f32 %v5524_v13, %v5558_v18  ;;  %v4195_v18 = vld [vmem:[%s6534_s4 + $0x40] sm:$0xff] }
  0xc9   : > { %v1147_v49 = vmul.f32 %v5524_v13, %v5609_v9  ;;  %4850 = vmatprep.subr.bf16.mxu0 %v5242_v28  ;;  %v1067_v51 = vadd.f32 %v1055_v31, %v1006_v35  ;;  %v1102_v52 = vrot.slane %v1078_v37, 1  ;;  %v1103_v53 = vrot.slane %v1079_v38, 1  ;;  %v4197_v31 = vld [vmem:[%s6534_s4 + $0x50] sm:$0xff] }
  0xca   : > { %v1066_v50 = vadd.f32 %v1054_v29, %v1005_v32  ;;  %v1170_v54 = vrot.slane %v1146_v48, 1  ;;  %v1206_v44 = vmul.f32 %v5524_v13, %v5553_v57  ;;  %v1207_v58 = vmul.f32 %v5524_v13, %v5615_v14  ;;  %v4198_v32 = vld [vmem:[%s6534_s4 + $0x58] sm:$0xff] }
  0xcb   : > { %v1171_v55 = vrot.slane %v1147_v49, 1  ;;  %v636_v40 = vmul.f32 %v5414_v43, %v5553_v57  ;;  %v532_v59 = vrot.slane %v5607_v15, 1  ;;  %v1126_v26 = vadd.f32 %v1102_v52, %v1034_v46 }
  0xcc   : > { %v1127_v19 = vadd.f32 %v1103_v53, %v1035_v47  ;;  %v1194_v20 = vadd.f32 %v1170_v54, %v1066_v50  ;;  %v1230_v61 = vrot.slane %v1206_v44, 1  ;;  %v1231_v22 = vrot.slane %v1207_v58, 1 }
  0xcd   : > { %v1195_v56 = vadd.f32 %v1171_v55, %v1067_v51  ;;  %v452_v60 = vmul.f32 %v5409_v42, %v5553_v57  ;;  %v496_v63 = vadd.f32 %v484_v1, %v368_v7  ;;  %v600_v21 = vrot.slane %v5613_v10, 1 }
  0xce   : > { %v5661_v12 = vpack.c.bf16 %v4196_v17, %v4195_v18  ;;  %v1254_v34 = vadd.f32 %v1230_v61, %v1126_v26  ;;  %v1255_v2 = vadd.f32 %v1231_v22, %v1127_v19  ;;  %v1273_v3 = vadd.f32 %v5551_v39, %v1194_v20  ;;  %v5690_v17 = vpop.permute.xlu0 %330  ;;  %v4201_v61 = vld [vmem:[%s6534_s4 + $0x68] sm:$0xff] }
  0xcf   : > { %v1274_v15 = vadd.f32 %v5551_v39, %v1195_v56  ;;  %v660_v4 = vrot.slane %v636_v40, 1  ;;  %v556_v8 = vadd.f32 %v532_v59, %v452_v60  ;;  %v485_v23 = vmul.f32 %v5404_v41, %v5615_v14  ;;  %v4200_v56 = vld [vmem:[%s6534_s4 + $0x60] sm:$0xff] }
  0xd0   : > { %v509_v24 = vmul.f32 %v5404_v41, %v5609_v9  ;;  %vm1285_vm6 = vcmp.gt.f32.partialorder %v1273_v3, 0.0  ;;  %v1297_v57 = vmul.f32 0.1, %v1273_v3  ;;  %v624_v7 = vadd.f32 %v600_v21, %v496_v63  ;;  %v5712_v21 = vpop.permute.xlu1 %420 }
  0xd1   : > { %vm1286_vm7 = vcmp.gt.f32.partialorder %v1274_v15, 0.0  ;;  %v1298_v1 = vmul.f32 0.1, %v1274_v15  ;;  %v369_v10 = vmul.f32 %v5409_v42, %v5609_v9  ;;  %v1321_v27 = vadd.f32 %v5551_v39, %v1254_v34 }
  0xd2   : > { %v1322_v29 = vadd.f32 %v5551_v39, %v1255_v2  ;;  %v577_v35 = vmul.f32 %v5414_v43, %v5609_v9  ;;  %v709_v37 = vmul.f32 %v5431_v62, %v5609_v9  ;;  %v1309_v38 = vsel %vm1285_vm6, %v1273_v3, %v1297_v57 }
  0xd3   : > { %v1310_v46 = vsel %vm1286_vm7, %v1274_v15, %v1298_v1  ;;  %vm1333_vm8 = vcmp.gt.f32.partialorder %v1321_v27, 0.0  ;;  %v1345_v47 = vmul.f32 0.1, %v1321_v27  ;;  %v453_v49 = vmul.f32 %v5409_v42, %v5615_v14 }
  0xd4   : > { %vm1334_vm9 = vcmp.gt.f32.partialorder %v1322_v29, 0.0  ;;  %v1346_v48 = vmul.f32 0.1, %v1322_v29  ;;  %v533_v50 = vrot.slane %v509_v24, 1  ;;  %v1477_v51 = vrot.slane %v5599_v0, 1 }
  0xd5   : > { %v5686_v52 = vpack.c.bf16 %v4198_v32, %v4197_v31  ;;  %v637_v53 = vmul.f32 %v5414_v43, %v5615_v14  ;;  %v684_v54 = vadd.f32 %v660_v4, %v556_v8  ;;  %v1357_v55 = vsel %vm1333_vm8, %v1321_v27, %v1345_v47 }
  0xd6   : > { %v1358_v44 = vsel %vm1334_vm9, %v1322_v29, %v1346_v48  ;;  %v497_v58 = vadd.f32 %v485_v23, %v369_v10  ;;  %v601_v18 = vrot.slane %v577_v35, 1  ;;  %v1369_v40 = vmax.f32 %v1309_v38, %v1357_v55  ;;  %4462 = vmatmul.mubr.msk.f32.vlgmr.msra.gmra.mrb[0].mxu0 %vm1397_vm1, %v1477_v51  ;;  %v5754_v48 = vpop.permute.xlu0 %335 }
  0xd7   : > { %v1370_v59 = vmax.f32 %v1310_v46, %v1358_v44  ;;  %v738_v26 = vmul.f32 %v5431_v62, %v5615_v14  ;;  %v5697_v19 = vmul.f32 %v5450_v11, %v5615_v14  ;;  %v721_v20 = vadd.f32 %v709_v37, %v624_v7  ;;  %4852 = vmatpush3.bf16.msra.mxu0 %v5661_v12 }
  0xd8   : > { %4472 = vmatprep.mubr.msk.f32.mxu0 %vm5243_vm0, %v5244_v36  ;;  %v557_v22 = vadd.f32 %v533_v50, %v453_v49  ;;  %v794_v60 = vmul.f32 %v5445_v6, %v5609_v9  ;;  %v862_v63 = vmul.f32 %v5450_v11, %v5609_v9  ;;  %4853 = vmatprep.subr.bf16.mxu0 %v5242_v28  ;;  %v661_v15 = vrot.slane %v637_v53, 1 }
  0xd9   : > { %v5714_v34 = vmax.f32 %v1369_v40, %v1370_v59  ;;  %v770_v2 = vmul.f32 %v5445_v6, %v5615_v14  ;;  %v510_v3 = vmul.f32 %v5404_v41, %v5690_v17  ;;  %v750_v4 = vadd.f32 %v738_v26, %v684_v54  ;;  %v5760_v54 = vpop.permute.xlu1 %425 }
  0xda   : > { %v625_v8 = vadd.f32 %v601_v18, %v497_v58  ;;  %v5723_v23 = vpack.c.bf16 %v4201_v61, %v4200_v56  ;;  %v946_v9 = vrot.slane %v5697_v19, 1  ;;  %v638_v57 = vmul.f32 %v5414_v43, %v5712_v21 }
  0xdb   : > { %4550 = vmatmul.mubr.msk.f32.vlgmr.msra.gmra.mrb[0].mxu1 %vm1397_vm1, %v5714_v34  ;;  %v782_v24 = vadd.f32 %v770_v2, %v721_v20  ;;  %v710_v14 = vmul.f32 %v5431_v62, %v5690_v17  ;;  %v818_v1 = vrot.slane %v794_v60, 1  ;;  %v886_v7 = vrot.slane %v862_v63, 1  ;;  %4855 = vmatpush3.bf16.msra.mxu0 %v5686_v52 }
  0xdc   : > { %4900 = vmatpush3.bf16.msra.mxu1 %v5460_v16  ;;  %4560 = vmatprep.mubr.msk.f32.mxu1 %vm5243_vm0, %v5244_v36  ;;  %v454_v10 = vmul.f32 %v5409_v42, %v5712_v21  ;;  %v685_v27 = vadd.f32 %v661_v15, %v557_v22  ;;  %v486_v29 = vmul.f32 %v5404_v41, %v5712_v21  ;;  %v534_v32 = vrot.slane %v510_v3, 1 }
  0xdd   : > { %4901 = vmatprep.subr.bf16.mxu1 %v5242_v28  ;;  %v370_v31 = vmul.f32 %v5409_v42, %v5690_v17  ;;  %v578_v35 = vmul.f32 %v5414_v43, %v5690_v17  ;;  %4856 = vmatprep.subr.bf16.mxu0 %v5242_v28  ;;  %v5744_v37 = vadd.f32 %v818_v1, %v750_v4  ;;  %v662_v50 = vrot.slane %v638_v57, 1 }
  0xde   : > { %v739_v38 = vmul.f32 %v5431_v62, %v5712_v21  ;;  %v771_v46 = vmul.f32 %v5445_v6, %v5712_v21  ;;  %v5752_v47 = vmul.f32 %v5450_v11, %v5712_v21  ;;  %v5756_v49 = vadd.f32 %v886_v7, %v782_v24  ;;  %v4202_v7 = vld [vmem:[%s6534_s4 + $0x70] sm:$0xff] }
  0xdf   : > { %v722_v51 = vadd.f32 %v710_v14, %v625_v8  ;;  %v795_v53 = vmul.f32 %v5445_v6, %v5690_v17  ;;  %v5765_v44 = vmul.f32 %v5481_v30, %v5712_v21  ;;  %v863_v58 = vmul.f32 %v5450_v11, %v5690_v17 }
  0xe0   : > { %4903 = vmatpush3.bf16.msra.mxu1 %v5583_v45  ;;  %v751_v55 = vadd.f32 %v739_v38, %v685_v27  ;;  %v1714_v18 = vrot.slane %v5714_v34, 1  ;;  %v498_v40 = vadd.f32 %v486_v29, %v370_v31  ;;  %v558_v59 = vadd.f32 %v534_v32, %v454_v10  ;;  %v4203_v10 = vld [vmem:[%s6534_s4 + $0x78] sm:$0xff] }
  0xe1   : > { %4904 = vmatprep.subr.bf16.mxu1 %v5242_v28  ;;  %v602_v26 = vrot.slane %v578_v35, 1  ;;  %v511_v20 = vmul.f32 %v5404_v41, %v5754_v48  ;;  %v947_v56 = vrot.slane %v5752_v47, 1  ;;  %v5776_v61 = vmul.f32 %v5515_v5, %v5712_v21 }
  0xe2   : > { %v487_v22 = vmul.f32 %v5404_v41, %v5760_v54  ;;  %v1556_v60 = vrot.slane %v5599_v0, 2  ;;  %v783_v63 = vadd.f32 %v771_v46, %v722_v51  ;;  %v819_v2 = vrot.slane %v795_v53, 1 }
  0xe3   : > { %4561 = vmatmul.mubr.msk.f32.vlgmr.msra.gmra.mrb[0].mxu1 %vm1397_vm1, %v1714_v18  ;;  %v371_v3 = vmul.f32 %v5409_v42, %v5754_v48  ;;  %v579_v15 = vmul.f32 %v5414_v43, %v5754_v48  ;;  %v887_v41 = vrot.slane %v863_v58, 1  ;;  %v995_v4 = vmul.f32 %v5481_v30, %v5690_v17 }
  0xe4   : > { %4906 = vmatpush3.bf16.msra.mxu1 %v5661_v12  ;;  %4571 = vmatprep.mubr.msk.f32.mxu1 %vm5243_vm0, %v5244_v36  ;;  %v5795_v0 = vmul.f32 %v5515_v5, %v5690_v17  ;;  %v455_v8 = vmul.f32 %v5409_v42, %v5760_v54  ;;  %v626_v24 = vadd.f32 %v602_v26, %v498_v40  ;;  %v535_v1 = vrot.slane %v511_v20, 1 }
  0xe5   : > { %4907 = vmatprep.subr.bf16.mxu1 %v5242_v28  ;;  %4473 = vmatmul.mubr.msk.f32.vlgmr.msra.gmra.mrb[0].mxu0 %vm1397_vm1, %v1556_v60  ;;  %v843_v57 = vadd.f32 %v819_v2, %v751_v55  ;;  %v686_v14 = vadd.f32 %v662_v50, %v558_v59  ;;  %v639_v42 = vmul.f32 %v5414_v43, %v5760_v54  ;;  %v603_v38 = vrot.slane %v579_v15, 1  ;;  %v4205_v43 = vld [vmem:[%s6534_s4 + $0x80] sm:$0xff]  ;;  %v4206_v50 = vld [vmem:[%s6534_s4 + $0x88] sm:$0xff]  ;;  %v4207_v15 = vld [vmem:[%s6534_s4 + $0x90] sm:$0xff] }
  0xe6   : > { %4858 = vmatpush3.bf16.msra.mxu0 %v5723_v23  ;;  %4483 = vmatprep.mubr.msk.f32.mxu0 %vm5243_vm0, %v5244_v36  ;;  %v740_v27 = vmul.f32 %v5431_v62, %v5760_v54  ;;  %v5816_v29 = vmul.f32 %v5445_v6, %v5760_v54  ;;  %v5820_v31 = vmul.f32 %v5450_v11, %v5760_v54  ;;  %v1793_v58 = vrot.slane %v5714_v34, 2 }
  0xe7   : > { %4859 = vmatprep.subr.bf16.mxu0 %v5242_v28  ;;  %v911_v32 = vadd.f32 %v887_v41, %v783_v63  ;;  %v499_v35 = vadd.f32 %v487_v22, %v371_v3  ;;  %v711_v46 = vmul.f32 %v5431_v62, %v5754_v48  ;;  %v1025_v51 = vmul.f32 %v5481_v30, %v5760_v54  ;;  %v5850_v22 = vpop.permute.xlu0 %340  ;;  %v4208_v41 = vld [vmem:[%s6534_s4 + $0x98] sm:$0xff] }
  0xe8   : > { %4909 = vmatpush3.bf16.msra.mxu1 %v5686_v52  ;;  %v1057_v53 = vmul.f32 %v5515_v5, %v5760_v54  ;;  %v5837_v55 = vpack.c.bf16 %v4203_v10, %v4202_v7  ;;  %v5840_v40 = vadd.f32 %v740_v27, %v686_v14  ;;  %v559_v59 = vadd.f32 %v535_v1, %v455_v8  ;;  %v5875_v10 = vpop.permute.xlu1 %430 }
  0xe9   : > { %4910 = vmatprep.subr.bf16.mxu1 %v5242_v28  ;;  %v5844_v26 = vmul.f32 %v5445_v6, %v5754_v48  ;;  %v5848_v20 = vmul.f32 %v5450_v11, %v5754_v48  ;;  %v1104_v60 = vrot.slane %v5795_v0, 1  ;;  %v996_v63 = vmul.f32 %v5481_v30, %v5754_v48 }
  0xea   : > { %v1081_v2 = vmul.f32 %v5515_v5, %v5754_v48  ;;  %4861 = vmatpush3.bf16.msra.mxu0 %v5837_v55  ;;  %v5861_v3 = vpack.c.bf16 %v4206_v50, %v4205_v43  ;;  %v663_v0 = vrot.slane %v639_v42, 1  ;;  %v627_v8 = vadd.f32 %v603_v38, %v499_v35 }
  0xeb   : > { %4572 = vmatmul.mubr.msk.f32.vlgmr.msra.gmra.mrb[0].mxu1 %vm1397_vm1, %v1793_v58  ;;  %v723_v14 = vadd.f32 %v711_v46, %v626_v24  ;;  %4862 = vmatprep.subr.bf16.mxu0 %v5242_v28  ;;  %v970_v1 = vadd.f32 %v946_v9, %v5744_v37  ;;  %v948_v7 = vrot.slane %v5820_v31, 1  ;;  %v712_v27 = vmul.f32 %v5431_v62, %v5850_v22 }
  0xec   : > { %4912 = vmatpush3.bf16.msra.mxu1 %v5723_v23  ;;  %4582 = vmatprep.mubr.msk.f32.mxu1 %vm5243_vm0, %v5244_v36  ;;  %v971_v24 = vadd.f32 %v947_v56, %v843_v57  ;;  %v1007_v42 = vadd.f32 %v995_v4, %v5756_v49  ;;  %v687_v35 = vadd.f32 %v663_v0, %v559_v59  ;;  %v1105_v56 = vrot.slane %v1081_v2, 1 }
  0xed   : > { %4913 = vmatprep.subr.bf16.mxu1 %v5242_v28  ;;  %4484 = vmatmul.mubr.msk.f32.vlgmr.msra.gmra.mrb[0].mxu0 %vm1397_vm1, %v5714_v34  ;;  %v5887_v19 = vpack.c.bf16 %v4208_v41, %v4207_v15  ;;  %v1008_v9 = vadd.f32 %v996_v63, %v911_v32  ;;  %v1036_v37 = vadd.f32 %v5765_v44, %v970_v1  ;;  %v820_v1 = vrot.slane %v5844_v26, 1  ;;  %v4221_v34 = vld [vmem:[%s6534_s4 + $0xe8] sm:$0xff] }
  0xee   : > { %4864 = vmatpush3.bf16.msra.mxu0 %v5861_v3  ;;  %v1037_v38 = vadd.f32 %v1025_v51, %v971_v24  ;;  %v1068_v46 = vadd.f32 %v5776_v61, %v1007_v42  ;;  %v1148_v47 = vmul.f32 %v5524_v13, %v5690_v17  ;;  %v1149_v49 = vmul.f32 %v5524_v13, %v5754_v48  ;;  %v4210_v61 = vld [vmem:[%s6534_s4 + $0xa0] sm:$0xff]  ;;  %v4211_v17 = vld [vmem:[%s6534_s4 + $0xa8] sm:$0xff]  ;;  %v5934_v42 = vpop.permute.xlu1 %435 }
  0xef   : > { %v741_v4 = vmul.f32 %v5431_v62, %v5875_v10  ;;  %v773_v57 = vmul.f32 %v5445_v6, %v5875_v10  ;;  %4865 = vmatprep.subr.bf16.mxu0 %v5242_v28  ;;  %v1069_v44 = vadd.f32 %v1057_v53, %v1008_v9  ;;  %v724_v48 = vadd.f32 %v712_v27, %v627_v8 }
  0xf0   : > { %4915 = vmatpush3.bf16.msra.mxu1 %v5837_v55  ;;  %v797_v62 = vmul.f32 %v5445_v6, %v5850_v22  ;;  %v1172_v32 = vrot.slane %v1148_v47, 1  ;;  %v1173_v43 = vrot.slane %v1149_v49, 1  ;;  %4494 = vmatprep.mubr.msk.f32.mxu0 %vm5243_vm0, %v5244_v36  ;;  %v865_v50 = vmul.f32 %v5450_v11, %v5850_v22  ;;  %v4216_v47 = vld [vmem:[%s6534_s4 + $0xc8] sm:$0xff] }
  0xf1   : > { %4916 = vmatprep.subr.bf16.mxu1 %v5242_v28  ;;  %v1128_v51 = vadd.f32 %v1104_v60, %v1036_v37  ;;  %v1208_v53 = vmul.f32 %v5524_v13, %v5712_v21  ;;  %v1209_v59 = vmul.f32 %v5524_v13, %v5760_v54  ;;  %v1129_v6 = vadd.f32 %v1105_v56, %v1037_v38  ;;  %v4212_v21 = vld [vmem:[%s6534_s4 + $0xb0] sm:$0xff]  ;;  %v4213_v54 = vld [vmem:[%s6534_s4 + $0xb8] sm:$0xff] }
  0xf2   : > { %4867 = vmatpush3.bf16.msra.mxu0 %v5887_v19  ;;  %v1196_v63 = vadd.f32 %v1172_v32, %v1068_v46  ;;  %v1197_v2 = vadd.f32 %v1173_v43, %v1069_v44  ;;  %v5920_v15 = vpack.c.bf16 %v4211_v17, %v4210_v61  ;;  %v784_v41 = vadd.f32 %v5816_v29, %v723_v14  ;;  %v4215_v46 = vld [vmem:[%s6534_s4 + $0xc0] sm:$0xff]  ;;  %v5958_v44 = vpop.permute.xlu0 %345 }
  0xf3   : > { %v753_v0 = vadd.f32 %v741_v4, %v687_v35  ;;  %v925_v8 = vmul.f32 %v5450_v11, %v5875_v10  ;;  %v1232_v60 = vrot.slane %v1208_v53, 1  ;;  %4868 = vmatprep.subr.bf16.mxu0 %v5242_v28  ;;  %v888_v27 = vrot.slane %v5848_v20, 1  ;;  %v4217_v53 = vld [vmem:[%s6534_s4 + $0xd0] sm:$0xff] }
  0xf4   : > { %v785_v29 = vadd.f32 %v773_v57, %v724_v48  ;;  %v1233_v14 = vrot.slane %v1209_v59, 1  ;;  %v821_v24 = vrot.slane %v797_v62, 1  ;;  %v1275_v35 = vadd.f32 %v5551_v39, %v1196_v63  ;;  %v4218_v59 = vld [vmem:[%s6534_s4 + $0xd8] sm:$0xff] }
  0xf5   : > { %v1256_v11 = vadd.f32 %v1232_v60, %v1128_v51  ;;  %v1276_v9 = vadd.f32 %v5551_v39, %v1197_v2  ;;  %4495 = vmatmul.mubr.msk.f32.vlgmr.msra.gmra.mrb[0].mxu0 %vm1397_vm1, %v1714_v18  ;;  %v844_v37 = vadd.f32 %v820_v1, %v5840_v40  ;;  %v889_v38 = vrot.slane %v865_v50, 1 }
  0xf6   : > { %v1257_v26 = vadd.f32 %v1233_v14, %v1129_v6  ;;  %4870 = vmatpush3.bf16.msra.mxu0 %v5920_v15  ;;  %v5943_v20 = vpack.c.bf16 %v4213_v54, %v4212_v21  ;;  %4505 = vmatprep.mubr.msk.f32.mxu0 %vm5243_vm0, %v5244_v36  ;;  %v912_v18 = vadd.f32 %v888_v27, %v784_v41  ;;  %v949_v49 = vrot.slane %v925_v8, 1 }
  0xf7   : > { %v1026_v40 = vmul.f32 %v5481_v30, %v5875_v10  ;;  %v845_v56 = vadd.f32 %v821_v24, %v753_v0  ;;  %4871 = vmatprep.subr.bf16.mxu0 %v5242_v28  ;;  %v913_v4 = vadd.f32 %v889_v38, %v785_v29  ;;  %v1027_v57 = vmul.f32 %v5481_v30, %v5934_v42  ;;  %v4220_v29 = vld [vmem:[%s6534_s4 + $0xe0] sm:$0xff] }
  0xf8   : > { %v1323_v61 = vadd.f32 %v5551_v39, %v1256_v11  ;;  %v1324_v17 = vadd.f32 %v5551_v39, %v1257_v26  ;;  %vm1287_vm10 = vcmp.gt.f32.partialorder %v1275_v35, 0.0  ;;  %v1299_v48 = vmul.f32 0.1, %v1275_v35 }
  0xf9   : > { %v1300_v62 = vmul.f32 0.1, %v1276_v9  ;;  %v5962_v32 = vpack.c.bf16 %v4216_v47, %v4215_v46  ;;  %vm1288_vm11 = vcmp.gt.f32.partialorder %v1276_v9, 0.0  ;;  %v1083_v50 = vmul.f32 %v5515_v5, %v5958_v44 }
  0xfa   : > { %vm1335_vm12 = vcmp.gt.f32.partialorder %v1323_v61, 0.0  ;;  %vm1336_vm13 = vcmp.gt.f32.partialorder %v1324_v17, 0.0  ;;  %v1347_v43 = vmul.f32 0.1, %v1323_v61  ;;  %4873 = vmatpush3.bf16.msra.mxu0 %v5943_v20  ;;  %v1348_v51 = vmul.f32 0.1, %v1324_v17 }
  0xfb   : > { %4874 = vmatprep.subr.bf16.mxu0 %v5242_v28  ;;  %v972_v6 = vadd.f32 %v948_v7, %v844_v37  ;;  %v973_v63 = vadd.f32 %v949_v49, %v845_v56  ;;  %v997_v2 = vmul.f32 %v5481_v30, %v5850_v22  ;;  %v1082_v41 = vmul.f32 %v5515_v5, %v5850_v22 }
  0xfc   : > { %v998_v0 = vmul.f32 %v5481_v30, %v5958_v44  ;;  %v1359_v8 = vsel %vm1335_vm12, %v1323_v61, %v1347_v43  ;;  %v1311_v60 = vsel %vm1287_vm10, %v1275_v35, %v1299_v48  ;;  %v1312_v21 = vsel %vm1288_vm11, %v1276_v9, %v1300_v62 }
  0xfd   : > { %v1360_v54 = vsel %vm1336_vm13, %v1324_v17, %v1348_v51  ;;  %4506 = vmatmul.mubr.msk.f32.vlgmr.msra.gmra.mrb[0].mxu0 %vm1397_vm1, %v1793_v58  ;;  %v1039_v31 = vadd.f32 %v1027_v57, %v973_v63  ;;  %v1371_v7 = vmax.f32 %v1311_v60, %v1359_v8  ;;  %v5989_v27 = vpack.c.bf16 %v4218_v59, %v4217_v53  ;;  %v4225_v53 = vld [vmem:[%s6534_s4 + $0x100] sm:$0xff]  ;;  %v4226_v59 = vld [vmem:[%s6534_s4 + $0x108] sm:$0xff]  ;;  %v4227_v60 = vld [vmem:[%s6534_s4 + $0x110] sm:$0xff] }
  0xfe   : > { %v1372_v1 = vmax.f32 %v1312_v21, %v1360_v54  ;;  %4876 = vmatpush3.bf16.msra.mxu0 %v5962_v32  ;;  %4516 = vmatprep.mubr.msk.f32.mxu0 %vm5243_vm0, %v5244_v36  ;;  %v1107_v30 = vrot.slane %v1083_v50, 1  ;;  %v1010_v58 = vadd.f32 %v998_v0, %v913_v4  ;;  %v1038_v14 = vadd.f32 %v1026_v40, %v972_v6  ;;  %v4228_v21 = vld [vmem:[%s6534_s4 + $0x118] sm:$0xff] }
  0xff   : > { %4877 = vmatprep.subr.bf16.mxu0 %v5242_v28  ;;  %v1211_v24 = vmul.f32 %v5524_v13, %v5934_v42  ;;  %v1106_v11 = vrot.slane %v1082_v41, 1  ;;  %v1059_v35 = vmul.f32 %v5515_v5, %v5934_v42  ;;  %v1009_v37 = vadd.f32 %v997_v2, %v912_v18  ;;  %v4222_v18 = vld [vmem:[%s6534_s4 + $0xf0] sm:$0xff] }
 0x100   : > { %v6004_v9 = vmax.f32 %v1371_v7, %v1372_v1  ;;  %v1131_v38 = vadd.f32 %v1107_v30, %v1039_v31  ;;  %v1151_v26 = vmul.f32 %v5524_v13, %v5958_v44  ;;  %v1210_v46 = vmul.f32 %v5524_v13, %v5875_v10 }
 0x101   : > { %v1058_v47 = vmul.f32 %v5515_v5, %v5875_v10  ;;  %v6015_v49 = vpack.c.bf16 %v4221_v34, %v4220_v29  ;;  %v4223_v5 = vld [vmem:[%s6534_s4 + $0xf8] sm:$0xff]  ;;  %v1071_v40 = vadd.f32 %v1059_v35, %v1010_v58  ;;  %v1130_v56 = vadd.f32 %v1106_v11, %v1038_v14  ;;  %v6085_v29 = vld [vmem:[%s6532_s2 + $0x1] ss:$0 sm:$0xff] }
 0x102   : > { %4583 = vmatmul.mubr.msk.f32.vlgmr.msra.gmra.mrb[0].mxu1 %vm1397_vm1, %v6004_v9  ;;  %4879 = vmatpush3.bf16.msra.mxu0 %v5989_v27  ;;  %v1150_v4 = vmul.f32 %v5524_v13, %v5850_v22  ;;  %v1235_v57 = vrot.slane %v1211_v24, 1  ;;  %v1175_v17 = vrot.slane %v1151_v26, 1  ;;  %v1234_v48 = vrot.slane %v1210_v46, 1  ;;  %v6109_v46 = vld [vmem:[%s6532_s2 + $0x2] ss:$0 sm:$0xff] }
 0x103   : > { %4918 = vmatpush3.bf16.msra.mxu1 %v5861_v3  ;;  %4593 = vmatprep.mubr.msk.f32.mxu1 %vm5243_vm0, %v5244_v36  ;;  %v1070_v61 = vadd.f32 %v1058_v47, %v1009_v37  ;;  %v6033_v43 = vpack.c.bf16 %v4223_v5, %v4222_v18  ;;  %v6047_v6 = vrot.slane %v6004_v9, 1  ;;  %v6053_v41 = vpack.c.bf16 %v4226_v59, %v4225_v53 }
 0x104   : > { %4919 = vmatprep.subr.bf16.mxu1 %v5242_v28  ;;  %4880 = vmatprep.subr.bf16.mxu0 %v5242_v28  ;;  %v1259_v62 = vadd.f32 %v1235_v57, %v1131_v38  ;;  %v1174_v13 = vrot.slane %v1150_v4, 1  ;;  %v1199_v50 = vadd.f32 %v1175_v17, %v1071_v40  ;;  %v1258_v51 = vadd.f32 %v1234_v48, %v1130_v56  ;;  %v6102_v38 = vld [vmem:[%s6532_s2] ss:$0 sm:$0xff] }
 0x105   : > { %4517 = vmatmul.mubr.msk.f32.vlgmr.msra.gmra.mrb[0].mxu0 %vm1397_vm1, %v6004_v9  ;;  %v6072_v7 = vpack.c.bf16 %v4228_v21, %v4227_v60  ;;  %v513_v34 = vmul.f32 %v6085_v29, %v5958_v44  ;;  %v512_v24 = vmul.f32 %v6085_v29, %v5850_v22  ;;  %v488_v11 = vmul.f32 %v6085_v29, %v5875_v10  ;;  %v6149_v21 = vld [vmem:[%s6532_s2 + $0x3] ss:$0 sm:$0xff] }
 0x106   : > { %4882 = vmatpush3.bf16.msra.mxu0 %v6015_v49  ;;  %4527 = vmatprep.mubr.msk.f32.mxu0 %vm5243_vm0, %v5244_v36  ;;  %v1198_v63 = vadd.f32 %v1174_v13, %v1070_v61  ;;  %v1326_v2 = vadd.f32 %v5551_v39, %v1259_v62  ;;  %v1278_v0 = vadd.f32 %v5551_v39, %v1199_v50 }
 0x107   : > { %4921 = vmatpush3.bf16.msra.mxu1 %v5887_v19  ;;  %4883 = vmatprep.subr.bf16.mxu0 %v5242_v28  ;;  %v1325_v8 = vadd.f32 %v5551_v39, %v1258_v51  ;;  %v372_v26 = vmul.f32 %v6102_v38, %v5850_v22  ;;  %v580_v47 = vmul.f32 %v6109_v46, %v5850_v22  ;;  %v537_v40 = vrot.slane %v513_v34, 1 }
 0x108   : > { %4922 = vmatprep.subr.bf16.mxu1 %v5242_v28  ;;  %v1277_v54 = vadd.f32 %v5551_v39, %v1198_v63  ;;  %v1350_v31 = vmul.f32 0.1, %v1326_v2  ;;  %vm1338_vm14 = vcmp.gt.f32.partialorder %v1326_v2, 0.0  ;;  %v1302_v1 = vmul.f32 0.1, %v1278_v0 }
 0x109   : > { %v1349_v30 = vmul.f32 0.1, %v1325_v8  ;;  %v6080_v39 = vrot.slane %v6004_v9, 2  ;;  %vm1290_vm15 = vcmp.gt.f32.partialorder %v1278_v0, 0.0  ;;  %vm1337_vm2 = vcmp.gt.f32.partialorder %v1325_v8, 0.0 }
 0x10a   : > { %4594 = vmatmul.mubr.msk.f32.vlgmr.msra.gmra.mrb[0].mxu1 %vm1397_vm1, %v6047_v6  ;;  %4885 = vmatpush3.bf16.msra.mxu0 %v6033_v43  ;;  %v1301_v58 = vmul.f32 0.1, %v1277_v54  ;;  %v1362_v14 = vsel %vm1338_vm14, %v1326_v2, %v1350_v31  ;;  %vm1289_vm3 = vcmp.gt.f32.partialorder %v1277_v54, 0.0  ;;  %v1314_v35 = vsel %vm1290_vm15, %v1278_v0, %v1302_v1  ;;  %v6153_v31 = vpop.permute.xlu1 %440  ;;  %v6155_v1 = vpop.permute.xlu0 %350 }
 0x10b   : > { %4924 = vmatpush3.bf16.msra.mxu1 %v5920_v15  ;;  %4604 = vmatprep.mubr.msk.f32.mxu1 %vm5243_vm0, %v5244_v36  ;;  %v1361_v37 = vsel %vm1337_vm2, %v1325_v8, %v1349_v30  ;;  %v1374_v18 = vmax.f32 %v1314_v35, %v1362_v14  ;;  %v489_v5 = vmul.f32 %v6085_v29, %v5934_v42  ;;  %v536_v4 = vrot.slane %v512_v24, 1 }
 0x10c   : > { %4925 = vmatprep.subr.bf16.mxu1 %v5242_v28  ;;  %4886 = vmatprep.subr.bf16.mxu0 %v5242_v28  ;;  %v1313_v56 = vsel %vm1289_vm3, %v1277_v54, %v1301_v58  ;;  %v373_v57 = vmul.f32 %v6102_v38, %v5958_v44  ;;  %v581_v22 = vmul.f32 %v6109_v46, %v5958_v44  ;;  %v604_v51 = vrot.slane %v580_v47, 1 }
 0x10d   : > { %4528 = vmatmul.mubr.msk.f32.vlgmr.msra.gmra.mrb[0].mxu0 %vm1397_vm1, %v6047_v6  ;;  %v1373_v61 = vmax.f32 %v1313_v56, %v1361_v37  ;;  %v456_v17 = vmul.f32 %v6102_v38, %v5875_v10  ;;  %v457_v48 = vmul.f32 %v6102_v38, %v5934_v42  ;;  %v641_v62 = vmul.f32 %v6109_v46, %v5934_v42 }
 0x10e   : > { %4888 = vmatpush3.bf16.msra.mxu0 %v6053_v41  ;;  %4538 = vmatprep.mubr.msk.f32.mxu0 %vm5243_vm0, %v5244_v36  ;;  %v640_v13 = vmul.f32 %v6109_v46, %v5875_v10  ;;  %v500_v50 = vadd.f32 %v488_v11, %v372_v26  ;;  %v501_v2 = vadd.f32 %v489_v5, %v373_v57  ;;  %v605_v0 = vrot.slane %v581_v22, 1  ;;  %v6171_v11 = vld [vmem:[%s6532_s2 + $0x4] ss:$0 sm:$0xff] }
 0x10f   : > { %4927 = vmatpush3.bf16.msra.mxu1 %v5943_v20  ;;  %4889 = vmatprep.subr.bf16.mxu0 %v5242_v28  ;;  %v6138_v53 = vmax.f32 %v1373_v61, %v1374_v18  ;;  %v561_v59 = vadd.f32 %v537_v40, %v457_v48  ;;  %v560_v63 = vadd.f32 %v536_v4, %v456_v17  ;;  %v665_v8 = vrot.slane %v641_v62, 1  ;;  %v6190_v40 = vld [vmem:[%s6532_s2 + $0x5] ss:$0 sm:$0xff] }
 0x110   : > { %4928 = vmatprep.subr.bf16.mxu1 %v5242_v28  ;;  %v664_v10 = vrot.slane %v640_v13, 1  ;;  %v628_v60 = vadd.f32 %v604_v51, %v500_v50  ;;  %v713_v54 = vmul.f32 %v6149_v21, %v5958_v44  ;;  %v629_v58 = vadd.f32 %v605_v0, %v501_v2  ;;  %v6210_v50 = vpop.permute.xlu0 %355 }
 0x111   : > { %v689_v30 = vadd.f32 %v665_v8, %v561_v59  ;;  %v743_v14 = vmul.f32 %v6149_v21, %v6153_v31  ;;  %v714_v24 = vmul.f32 %v6149_v21, %v6155_v1  ;;  %v6179_v37 = vrot.slane %v6138_v53, 1 }
 0x112   : > { %4605 = vmatmul.mubr.msk.f32.vlgmr.msra.gmra.mrb[0].mxu1 %vm1397_vm1, %v6080_v39  ;;  %4891 = vmatpush3.bf16.msra.mxu0 %v6072_v7  ;;  %v688_v34 = vadd.f32 %v664_v10, %v560_v63  ;;  %v725_v35 = vadd.f32 %v713_v54, %v628_v60  ;;  %v742_v26 = vmul.f32 %v6149_v21, %v5934_v42  ;;  %v6223_v60 = vpop.permute.xlu1 %445  ;;  %vm4080_vm15 = vcmask 122880  }
 0x113   : > { %4930 = vmatpush3.bf16.msra.mxu1 %v5962_v32  ;;  %4615 = vmatprep.mubr.msk.f32.mxu1 %vm5243_vm0, %v5244_v36  ;;  %v798_v47 = vmul.f32 %v6171_v11, %v5958_v44  ;;  %v755_v18 = vadd.f32 %v743_v14, %v689_v30  ;;  %v774_v5 = vmul.f32 %v6171_v11, %v5934_v42 }
 0x114   : > { %4931 = vmatprep.subr.bf16.mxu1 %v5242_v28  ;;  %4946 = vmatprep.subr.bf16.mxu0 %v5242_v28  ;;  %v926_v56 = vmul.f32 %v6190_v40, %v5934_v42  ;;  %v866_v4 = vmul.f32 %v6190_v40, %v5958_v44  ;;  %v754_v57 = vadd.f32 %v742_v26, %v688_v34  ;;  %v6233_v34 = vrot.slane %v6138_v53, 2 }
 0x115   : > { %4539 = vmatmul.mubr.msk.f32.vlgmr.msra.gmra.mrb[0].mxu0 %vm1397_vm1, %v6080_v39  ;;  %v927_v22 = vmul.f32 %v6190_v40, %v6153_v31  ;;  %v726_v61 = vadd.f32 %v714_v24, %v629_v58  ;;  %v786_v42 = vadd.f32 %v774_v5, %v725_v35  ;;  %v822_v44 = vrot.slane %v798_v47, 1  ;;  %v6238_v58 = vld [vmem:[%s6532_s2 + $0x6] ss:$0 sm:$0xff]  ;;  %v6245_v24 = vld [vmem:[%s6532_s2 + $0x7] ss:$0 sm:$0xff] }
 0x116   : > { %4948 = vmatpush3.bf16.msra.mxu0 %v5369_v25  ;;  %4648 = vmatprep.mubr.msk.f32.mxu0 %vm5243_vm0, %v5244_v36  ;;  %v775_v48 = vmul.f32 %v6171_v11, %v6153_v31  ;;  %v867_v13 = vmul.f32 %v6190_v40, %v6155_v1  ;;  %v950_v51 = vrot.slane %v926_v56, 1  ;;  %v890_v59 = vrot.slane %v866_v4, 1 }
 0x117   : > { %4933 = vmatpush3.bf16.msra.mxu1 %v5989_v27  ;;  %4949 = vmatprep.subr.bf16.mxu0 %v5242_v28  ;;  %v458_v63 = vmul.f32 %v6102_v38, %v6153_v31  ;;  %v846_v2 = vadd.f32 %v822_v44, %v754_v57  ;;  %v6221_v0 = vmul.f32 %v6085_v29, %v6153_v31  ;;  %v951_v8 = vrot.slane %v927_v22, 1 }
 0x118   : > { %4934 = vmatprep.subr.bf16.mxu1 %v5242_v28  ;;  %v787_v10 = vadd.f32 %v775_v48, %v726_v61  ;;  %v514_v54 = vmul.f32 %v6085_v29, %v6155_v1  ;;  %v515_v30 = vmul.f32 %v6085_v29, %v6210_v50  ;;  %v1028_v14 = vmul.f32 %v6238_v58, %v6153_v31 }
 0x119   : > { %v891_v35 = vrot.slane %v867_v13, 1  ;;  %v374_v47 = vmul.f32 %v6102_v38, %v6155_v1  ;;  %v1029_v5 = vmul.f32 %v6238_v58, %v6223_v60  ;;  %v1085_v4 = vmul.f32 %v6245_v24, %v6210_v50 }
 0x11a   : > { %4616 = vmatmul.mubr.msk.f32.vlgmr.msra.gmra.mrb[0].mxu1 %vm1397_vm1, %v6138_v53  ;;  %4951 = vmatpush3.bf16.msra.mxu0 %v5387_v33  ;;  %v974_v57 = vadd.f32 %v950_v51, %v846_v2  ;;  %v538_v22 = vrot.slane %v514_v54, 1  ;;  %v999_v61 = vmul.f32 %v6238_v58, %v6155_v1  ;;  %v642_v44 = vmul.f32 %v6109_v46, %v6153_v31 }
 0x11b   : > { %4936 = vmatpush3.bf16.msra.mxu1 %v6015_v49  ;;  %4626 = vmatprep.mubr.msk.f32.mxu1 %vm5243_vm0, %v5244_v36  ;;  %v915_v56 = vadd.f32 %v891_v35, %v787_v10  ;;  %v643_v48 = vmul.f32 %v6109_v46, %v6223_v60  ;;  %v375_v51 = vmul.f32 %v6102_v38, %v6210_v50 }
 0x11c   : > { %4937 = vmatprep.subr.bf16.mxu1 %v5242_v28  ;;  %4952 = vmatprep.subr.bf16.mxu0 %v5242_v28  ;;  %v583_v2 = vmul.f32 %v6109_v46, %v6210_v50  ;;  %v1040_v10 = vadd.f32 %v1028_v14, %v974_v57  ;;  %v1061_v54 = vmul.f32 %v6245_v24, %v6223_v60 }
 0x11d   : > { %4649 = vmatmul.mubr.msk.f32.vlgmr.msra.gmra.mrb[2].mxu0 %vm1397_vm1, %v6004_v9  ;;  %v799_v9 = vmul.f32 %v6171_v11, %v6155_v1  ;;  %v582_v35 = vmul.f32 %v6109_v46, %v6155_v1  ;;  %v6309_v46 = vpop.permute.xlu1 %731 }
 0x11e   : > { %4954 = vmatpush3.bf16.msra.mxu0 %v5460_v16  ;;  %4659 = vmatprep.mubr.msk.f32.mxu0 %vm5243_vm0, %v5244_v36 }
 0x11f   : > { %4939 = vmatpush3.bf16.msra.mxu1 %v6033_v43  ;;  %4955 = vmatprep.subr.bf16.mxu0 %v5242_v28  ;;  %v823_v17 = vrot.slane %v799_v9, 1  ;;  %v6249_v9 = vmul.f32 %v6245_v24, %v6153_v31 }
 0x120   : > { %4940 = vmatprep.subr.bf16.mxu1 %v5242_v28 }
 0x121   : > { %v847_v62 = vadd.f32 %v823_v17, %v755_v18  ;;  %v1084_v18 = vmul.f32 %v6245_v24, %v6155_v1  ;;  %v1000_v17 = vmul.f32 %v6238_v58, %v6210_v50 }
 0x122   : > { %4627 = vmatmul.mubr.msk.f32.vlgmr.msra.gmra.mrb[0].mxu1 %vm1397_vm1, %v6179_v37  ;;  %4957 = vmatpush3.bf16.msra.mxu0 %v5583_v45 }
 0x123   : > { %4942 = vmatpush3.bf16.msra.mxu1 %v6053_v41  ;;  %4637 = vmatprep.mubr.msk.f32.mxu1 %vm5243_vm0, %v5244_v36  ;;  %v975_v26 = vadd.f32 %v951_v8, %v847_v62  ;;  %v1108_v13 = vrot.slane %v1084_v18, 1  ;;  %v1109_v8 = vrot.slane %v1085_v4, 1  ;;  %v667_v4 = vrot.slane %v643_v48, 1 }
 0x124   : > { %4943 = vmatprep.subr.bf16.mxu1 %v5242_v28  ;;  %4958 = vmatprep.subr.bf16.mxu0 %v5242_v28 }
 0x125   : > { %4660 = vmatmul.mubr.msk.f32.vlgmr.msra.gmra.mrb[2].mxu0 %vm1397_vm1, %v6047_v6  ;;  %v914_v6 = vadd.f32 %v890_v59, %v786_v42  ;;  %v539_v42 = vrot.slane %v515_v30, 1  ;;  %v1041_v62 = vadd.f32 %v1029_v5, %v975_v26  ;;  %v491_v59 = vmul.f32 %v6085_v29, %v6223_v60 }
 0x126   : > { %4960 = vmatpush3.bf16.msra.mxu0 %v5661_v12  ;;  %4670 = vmatprep.mubr.msk.f32.mxu0 %vm5243_vm0, %v5244_v36  ;;  %v562_v30 = vadd.f32 %v538_v22, %v458_v63  ;;  %v6311_v63 = vpop.permute.xlu0 %696 }
 0x127   : > { %4945 = vmatpush3.bf16.msra.mxu1 %v6072_v7  ;;  %4961 = vmatprep.subr.bf16.mxu0 %v5242_v28  ;;  %v1011_v26 = vadd.f32 %v999_v61, %v914_v6  ;;  %v1133_v14 = vadd.f32 %v1109_v8, %v1041_v62  ;;  %v503_v57 = vadd.f32 %v491_v59, %v375_v51 }
 0x128   : > { %5000 = vmatprep.subr.bf16.mxu1 %v5242_v28  ;;  %v744_v8 = vmul.f32 %v6149_v21, %v6223_v60 }
 0x12a   : > { %4638 = vmatmul.mubr.msk.f32.vlgmr.msra.gmra.mrb[0].mxu1 %vm1397_vm1, %v6233_v34  ;;  %4963 = vmatpush3.bf16.msra.mxu0 %v5686_v52 }
 0x12b   : > { %5002 = vmatpush3.bf16.msra.mxu1 %v5369_v25  ;;  %4747 = vmatprep.mubr.msk.f32.mxu1 %vm5243_vm0, %v5244_v36  ;;  %v459_v25 = vmul.f32 %v6102_v38, %v6223_v60  ;;  %v6293_v38 = vld [vmem:[%s6532_s2 + $0x8] ss:$0 sm:$0xff] }
 0x12c   : > { %5003 = vmatprep.subr.bf16.mxu1 %v5242_v28  ;;  %4964 = vmatprep.subr.bf16.mxu0 %v5242_v28  ;;  %v1213_v29 = vmul.f32 %v6293_v38, %v6223_v60  ;;  %v1153_v18 = vmul.f32 %v6293_v38, %v6210_v50  ;;  %v1212_v5 = vmul.f32 %v6293_v38, %v6153_v31 }
 0x12d   : > { %4671 = vmatmul.mubr.msk.f32.vlgmr.msra.gmra.mrb[2].mxu0 %vm1397_vm1, %v6080_v39  ;;  %v1012_v39 = vadd.f32 %v1000_v17, %v915_v56  ;;  %v666_v56 = vrot.slane %v642_v44, 1  ;;  %v607_v17 = vrot.slane %v583_v2, 1  ;;  %v1132_v31 = vadd.f32 %v1108_v13, %v1040_v10 }
 0x12e   : > { %4966 = vmatpush3.bf16.msra.mxu0 %v5723_v23  ;;  %4681 = vmatprep.mubr.msk.f32.mxu0 %vm5243_vm0, %v5244_v36  ;;  %v1152_v22 = vmul.f32 %v6293_v38, %v6155_v1  ;;  %v1237_v61 = vrot.slane %v1213_v29, 1  ;;  %v502_v44 = vadd.f32 %v6221_v0, %v374_v47  ;;  %v1177_v62 = vrot.slane %v1153_v18, 1 }
 0x12f   : > { %5005 = vmatpush3.bf16.msra.mxu1 %v5387_v33  ;;  %4967 = vmatprep.subr.bf16.mxu0 %v5242_v28  ;;  %v563_v33 = vadd.f32 %v539_v42, %v459_v25  ;;  %v1073_v6 = vadd.f32 %v1061_v54, %v1012_v39  ;;  %v690_v42 = vadd.f32 %v666_v56, %v562_v30  ;;  %v606_v25 = vrot.slane %v582_v35, 1 }
 0x130   : > { %5006 = vmatprep.subr.bf16.mxu1 %v5242_v28  ;;  %v1236_v13 = vrot.slane %v1212_v5, 1  ;;  %v1261_v51 = vadd.f32 %v1237_v61, %v1133_v14  ;;  %v745_v1 = vmul.f32 %v6149_v21, %v6309_v46  ;;  %v801_v0 = vmul.f32 %v6171_v11, %v6311_v63 }
 0x131   : > { %v691_v48 = vadd.f32 %v667_v4, %v563_v33  ;;  %v716_v47 = vmul.f32 %v6149_v21, %v6311_v63  ;;  %v1201_v59 = vadd.f32 %v1177_v62, %v1073_v6  ;;  %v800_v39 = vmul.f32 %v6171_v11, %v6210_v50  ;;  %v983_v62 = vpop.permute.xlu0 %982 }
 0x132   : > { %4748 = vmatmul.mubr.msk.f32.vlgmr.msra.gmra.mrb[2].mxu1 %vm1397_vm1, %v6138_v53  ;;  %4969 = vmatpush3.bf16.msra.mxu0 %v5837_v55  ;;  %v1260_v2 = vadd.f32 %v1236_v13, %v1132_v31  ;;  %v630_v10 = vadd.f32 %v606_v25, %v502_v44  ;;  %v715_v29 = vmul.f32 %v6149_v21, %v6210_v50  ;;  %v825_v21 = vrot.slane %v801_v0, 1 }
 0x133   : > { %5008 = vmatpush3.bf16.msra.mxu1 %v5460_v16  ;;  %4758 = vmatprep.mubr.msk.f32.mxu1 %vm5243_vm0, %v5244_v36  ;;  %v1072_v16 = vadd.f32 %v6249_v9, %v1011_v26  ;;  %v1176_v9 = vrot.slane %v1152_v22, 1  ;;  %v757_v54 = vadd.f32 %v745_v1, %v691_v48  ;;  %v756_v33 = vadd.f32 %v744_v8, %v690_v42  ;;  %v1018_v48 = vpop.permute.xlu1 %1017 }
 0x134   : > { %5009 = vmatprep.subr.bf16.mxu1 %v5242_v28  ;;  %4970 = vmatprep.subr.bf16.mxu0 %v5242_v28  ;;  %v929_v26 = vmul.f32 %v6190_v40, %v6309_v46  ;;  %v928_v56 = vmul.f32 %v6190_v40, %v6223_v60  ;;  %v824_v4 = vrot.slane %v800_v39, 1  ;;  %v869_v6 = vmul.f32 %v6190_v40, %v6311_v63 }
 0x135   : > { %4682 = vmatmul.mubr.msk.f32.vlgmr.msra.gmra.mrb[2].mxu0 %vm1397_vm1, %v6138_v53  ;;  %v631_v53 = vadd.f32 %v607_v17, %v503_v57  ;;  %v1200_v30 = vadd.f32 %v1176_v9, %v1072_v16  ;;  %v727_v57 = vadd.f32 %v715_v29, %v630_v10  ;;  %v777_v17 = vmul.f32 %v6171_v11, %v6309_v46 }
 0x136   : > { %4972 = vmatpush3.bf16.msra.mxu0 %v5861_v3  ;;  %4692 = vmatprep.mubr.msk.f32.mxu0 %vm5243_vm0, %v5244_v36  ;;  %v848_v61 = vadd.f32 %v824_v4, %v756_v33  ;;  %v776_v42 = vmul.f32 %v6171_v11, %v6223_v60  ;;  %v868_v44 = vmul.f32 %v6190_v40, %v6210_v50  ;;  %v953_v25 = vrot.slane %v929_v26, 1 }
 0x137   : > { %5011 = vmatpush3.bf16.msra.mxu1 %v5583_v45  ;;  %4973 = vmatprep.subr.bf16.mxu0 %v5242_v28  ;;  %v6345_v45 = vld [vmem:[%s6533_s3] ss:$0 sm:$0xff]  ;;  %v728_v14 = vadd.f32 %v716_v47, %v631_v53  ;;  %v952_v11 = vrot.slane %v928_v56, 1  ;;  %v893_v50 = vrot.slane %v869_v6, 1  ;;  %v1031_v47 = vmul.f32 %v6238_v58, %v1018_v48 }
 0x138   : > { %5012 = vmatprep.subr.bf16.mxu1 %v5242_v28  ;;  %v1328_v35 = vadd.f32 %v6345_v45, %v1261_v51  ;;  %v1280_v18 = vadd.f32 %v6345_v45, %v1201_v59  ;;  %v1327_v5 = vadd.f32 %v6345_v45, %v1260_v2  ;;  %v1279_v31 = vadd.f32 %v6345_v45, %v1200_v30 }
 0x139   : > { %v789_v16 = vadd.f32 %v777_v17, %v728_v14  ;;  %v788_v60 = vadd.f32 %v776_v42, %v727_v57  ;;  %v976_v0 = vadd.f32 %v952_v11, %v848_v61  ;;  %v892_v53 = vrot.slane %v868_v44, 1 }
 0x13a   : > { %4759 = vmatmul.mubr.msk.f32.vlgmr.msra.gmra.mrb[2].mxu1 %vm1397_vm1, %v6179_v37  ;;  %4975 = vmatpush3.bf16.msra.mxu0 %v5887_v19  ;;  %v1352_v22 = vmul.f32 0.1, %v1328_v35  ;;  %vm1340_vm4 = vcmp.gt.f32.partialorder %v1328_v35, 0.0  ;;  %v1351_v13 = vmul.f32 0.1, %v1327_v5  ;;  %vm1292_vm5 = vcmp.gt.f32.partialorder %v1280_v18, 0.0 }
 0x13b   : > { %5014 = vmatpush3.bf16.msra.mxu1 %v5661_v12  ;;  %4769 = vmatprep.mubr.msk.f32.mxu1 %vm5243_vm0, %v5244_v36  ;;  %v849_v12 = vadd.f32 %v825_v21, %v757_v54  ;;  %vm1339_vm6 = vcmp.gt.f32.partialorder %v1327_v5, 0.0  ;;  %v1303_v51 = vmul.f32 0.1, %v1279_v31  ;;  %vm1291_vm7 = vcmp.gt.f32.partialorder %v1279_v31, 0.0 }
 0x13c   : > { %5015 = vmatprep.subr.bf16.mxu1 %v5242_v28  ;;  %4976 = vmatprep.subr.bf16.mxu0 %v5242_v28  ;;  %v1364_v1 = vsel %vm1340_vm4, %v1328_v35, %v1352_v22  ;;  %v917_v9 = vadd.f32 %v893_v50, %v789_v16  ;;  %v1363_v2 = vsel %vm1339_vm6, %v1327_v5, %v1351_v13 }
 0x13d   : > { %4693 = vmatmul.mubr.msk.f32.vlgmr.msra.gmra.mrb[2].mxu0 %vm1397_vm1, %v6179_v37  ;;  %v1304_v37 = vmul.f32 0.1, %v1280_v18  ;;  %v977_v40 = vadd.f32 %v953_v25, %v849_v12  ;;  %v1030_v8 = vmul.f32 %v6238_v58, %v6309_v46  ;;  %v1086_v39 = vmul.f32 %v6245_v24, %v6311_v63 }
 0x13e   : > { %4978 = vmatpush3.bf16.msra.mxu0 %v5920_v15  ;;  %4703 = vmatprep.mubr.msk.f32.mxu0 %vm5243_vm0, %v5244_v36  ;;  %v916_v29 = vadd.f32 %v892_v53, %v788_v60  ;;  %v1002_v54 = vmul.f32 %v6238_v58, %v983_v62  ;;  %v1315_v30 = vsel %vm1291_vm7, %v1279_v31, %v1303_v51 }
 0x13f   : > { %5017 = vmatpush3.bf16.msra.mxu1 %v5686_v52  ;;  %4979 = vmatprep.subr.bf16.mxu0 %v5242_v28  ;;  %v1087_v52 = vmul.f32 %v6245_v24, %v983_v62  ;;  %v1316_v59 = vsel %vm1292_vm5, %v1280_v18, %v1304_v37  ;;  %v1001_v35 = vmul.f32 %v6238_v58, %v6311_v63  ;;  %v1110_v5 = vrot.slane %v1086_v39, 1 }
 0x140   : > { %5018 = vmatprep.subr.bf16.mxu1 %v5242_v28  ;;  %v1376_v10 = vmax.f32 %v1316_v59, %v1364_v1  ;;  %v1375_v33 = vmax.f32 %v1315_v30, %v1363_v2  ;;  %v1042_v26 = vadd.f32 %v1030_v8, %v976_v0  ;;  %v1215_v21 = vmul.f32 %v6293_v38, %v1018_v48 }
 0x141   : > { %v1014_v14 = vadd.f32 %v1002_v54, %v917_v9  ;;  %v1111_v18 = vrot.slane %v1087_v52, 1  ;;  %v1013_v56 = vadd.f32 %v1001_v35, %v916_v29  ;;  %v1063_v4 = vmul.f32 %v6245_v24, %v1018_v48 }
 0x142   : > { %4770 = vmatmul.mubr.msk.f32.vlgmr.msra.gmra.mrb[2].mxu1 %vm1397_vm1, %v6233_v34  ;;  %4981 = vmatpush3.bf16.msra.mxu0 %v5943_v20  ;;  %v6410_v58 = vmax.f32 %v1375_v33, %v1376_v10  ;;  %v1155_v17 = vmul.f32 %v6293_v38, %v983_v62  ;;  %v1062_v12 = vmul.f32 %v6245_v24, %v6309_v46  ;;  %v1239_v31 = vrot.slane %v1215_v21, 1 }
 0x143   : > { %5020 = vmatpush3.bf16.msra.mxu1 %v5723_v23  ;;  %4780 = vmatprep.mubr.msk.f32.mxu1 %vm5243_vm0, %v5244_v36  ;;  %v1043_v23 = vadd.f32 %v1031_v47, %v977_v40  ;;  %v1154_v6 = vmul.f32 %v6293_v38, %v6311_v63  ;;  %v1075_v22 = vadd.f32 %v1063_v4, %v1014_v14 }
 0x144   : > { %5021 = vmatprep.subr.bf16.mxu1 %v5242_v28  ;;  %4982 = vmatprep.subr.bf16.mxu0 %v5242_v28  ;;  %v1179_v61 = vrot.slane %v1155_v17, 1  ;;  %v3258_v44 = vrot.slane %v6410_v58, 1  ;;  %v3332_v11 = vrot.slane %v6410_v58, 2 }
 0x145   : > { %4704 = vmatmul.mubr.msk.f32.vlgmr.msra.gmra.mrb[2].mxu0 %vm1397_vm1, %v6233_v34  ;;  %v1214_v34 = vmul.f32 %v6293_v38, %v6309_v46  ;;  %v1135_v57 = vadd.f32 %v1111_v18, %v1043_v23  ;;  %v1074_v46 = vadd.f32 %v1062_v12, %v1013_v56 }
 0x146   : > { %4984 = vmatpush3.bf16.msra.mxu0 %v5962_v32  ;;  %4714 = vmatprep.mubr.msk.f32.mxu0 %vm5243_vm0, %v5244_v36  ;;  %v1203_v63 = vadd.f32 %v1179_v61, %v1075_v22 }
 0x147   : > { %5023 = vmatpush3.bf16.msra.mxu1 %v5837_v55  ;;  %4985 = vmatprep.subr.bf16.mxu0 %v5242_v28  ;;  %v1134_v55 = vadd.f32 %v1110_v5, %v1042_v26  ;;  %v1238_v24 = vrot.slane %v1214_v34, 1  ;;  %v1263_v42 = vadd.f32 %v1239_v31, %v1135_v57 }
 0x148   : > { %5024 = vmatprep.subr.bf16.mxu1 %v5242_v28  ;;  %v1282_v62 = vadd.f32 %v6345_v45, %v1203_v63 }
 0x149   : > { %v1262_v38 = vadd.f32 %v1238_v24, %v1134_v55  ;;  %v1330_v48 = vadd.f32 %v6345_v45, %v1263_v42 }
 0x14a   : > { %4781 = vmatmul.mubr.msk.f32.vlgmr.msra.gmra.mrb[2].mxu1 %vm1397_vm1, %v6410_v58  ;;  %4987 = vmatpush3.bf16.msra.mxu0 %v5989_v27  ;;  %v1306_v13 = vmul.f32 0.1, %v1282_v62  ;;  %vm1294_vm9 = vcmp.gt.f32.partialorder %v1282_v62, 0.0 }
 0x14b   : > { %5026 = vmatpush3.bf16.msra.mxu1 %v5861_v3  ;;  %4791 = vmatprep.mubr.msk.f32.mxu1 %vm5243_vm0, %v5244_v36  ;;  %v1178_v3 = vrot.slane %v1154_v6, 1  ;;  %v1329_v16 = vadd.f32 %v6345_v45, %v1262_v38  ;;  %v1354_v37 = vmul.f32 0.1, %v1330_v48  ;;  %vm1342_vm8 = vcmp.gt.f32.partialorder %v1330_v48, 0.0 }
 0x14c   : > { %5027 = vmatprep.subr.bf16.mxu1 %v5242_v28  ;;  %4988 = vmatprep.subr.bf16.mxu0 %v5242_v28  ;;  %v1318_v40 = vsel %vm1294_vm9, %v1282_v62, %v1306_v13 }
 0x14d   : > { %4715 = vmatmul.mubr.msk.f32.vlgmr.msra.gmra.mrb[2].mxu0 %vm1397_vm1, %v6410_v58  ;;  %v1202_v25 = vadd.f32 %v1178_v3, %v1074_v46  ;;  %vm1341_vm10 = vcmp.gt.f32.partialorder %v1329_v16, 0.0 }
 0x14e   : > { %4990 = vmatpush3.bf16.msra.mxu0 %v6015_v49  ;;  %4725 = vmatprep.mubr.msk.f32.mxu0 %vm5243_vm0, %v5244_v36 }
 0x14f   : > { %5029 = vmatpush3.bf16.msra.mxu1 %v5887_v19  ;;  %4991 = vmatprep.subr.bf16.mxu0 %v5242_v28  ;;  %v1281_v19 = vadd.f32 %v6345_v45, %v1202_v25  ;;  %v1366_v45 = vsel %vm1342_vm8, %v1330_v48, %v1354_v37 }
 0x150   : > { %5030 = vmatprep.subr.bf16.mxu1 %v5242_v28  ;;  %v1378_v50 = vmax.f32 %v1318_v40, %v1366_v45 }
 0x151   : > { %v1305_v60 = vmul.f32 0.1, %v1281_v19  ;;  %vm1293_vm11 = vcmp.gt.f32.partialorder %v1281_v19, 0.0 }
 0x152   : > { %4792 = vmatmul.mubr.msk.f32.vlgmr.msra.gmra.mrb[2].mxu1 %vm1397_vm1, %v3258_v44  ;;  %4993 = vmatpush3.bf16.msra.mxu0 %v6033_v43 }
 0x153   : > { %5032 = vmatpush3.bf16.msra.mxu1 %v5920_v15  ;;  %4802 = vmatprep.mubr.msk.f32.mxu1 %vm5243_vm0, %v5244_v36  ;;  %v1353_v15 = vmul.f32 0.1, %v1329_v16  ;;  %v1317_v51 = vsel %vm1293_vm11, %v1281_v19, %v1305_v60 }
 0x154   : > { %5033 = vmatprep.subr.bf16.mxu1 %v5242_v28  ;;  %4994 = vmatprep.subr.bf16.mxu0 %v5242_v28 }
 0x155   : > { %4726 = vmatmul.mubr.msk.f32.vlgmr.msra.gmra.mrb[2].mxu0 %vm1397_vm1, %v3258_v44 }
 0x156   : > { %4996 = vmatpush3.bf16.msra.mxu0 %v6053_v41  ;;  %4736 = vmatprep.mubr.msk.f32.mxu0 %vm5243_vm0, %v5244_v36 }
 0x157   : > { %5035 = vmatpush3.bf16.msra.mxu1 %v5943_v20  ;;  %4997 = vmatprep.subr.bf16.mxu0 %v5242_v28  ;;  %v1365_v20 = vsel %vm1341_vm10, %v1329_v16, %v1353_v15 }
 0x158   : > { %5036 = vmatprep.subr.bf16.mxu1 %v5242_v28  ;;  %v1377_v1 = vmax.f32 %v1317_v51, %v1365_v20 }
 0x15a   : > { %4803 = vmatmul.mubr.msk.f32.vlgmr.msra.gmra.mrb[2].mxu1 %vm1397_vm1, %v3332_v11  ;;  %4999 = vmatpush3.bf16.msra.mxu0 %v6072_v7  ;;  %v1384_v0 = vmax.f32 %v1377_v1, %v1378_v50 }
 0x15b   : > { %5038 = vmatpush3.bf16.msra.mxu1 %v5962_v32  ;;  %4813 = vmatprep.mubr.msk.f32.mxu1 %vm5243_vm0, %v5244_v36 }
 0x15c   : > { %5039 = vmatprep.subr.bf16.mxu1 %v5242_v28  ;;  %v3909_v32 = vrot.slane %v1384_v0, 1 }
 0x15d   : > { %4737 = vmatmul.mubr.msk.f32.vlgmr.msra.gmra.mrb[2].mxu0 %vm1397_vm1, %v3332_v11 }
 0x15f   : > { %5041 = vmatpush3.bf16.msra.mxu1 %v5989_v27  ;;  %v3983_v27 = vrot.slane %v1384_v0, 2 }
 0x160   : > { %5042 = vmatprep.subr.bf16.mxu1 %v5242_v28 }
 0x162   : > { %4814 = vmatmul.mubr.msk.f32.vlgmr.msra.gmra.mrb[2].mxu1 %vm1397_vm1, %v1384_v0 }
 0x163   : > { %5044 = vmatpush3.bf16.msra.mxu1 %v6015_v49  ;;  %4824 = vmatprep.mubr.msk.f32.mxu1 %vm5243_vm0, %v5244_v36 }
 0x164   : > { %5045 = vmatprep.subr.bf16.mxu1 %v5242_v28 }
 0x167   : > { %5047 = vmatpush3.bf16.msra.mxu1 %v6033_v43  ;;  %v4188_v43 = vld [vmem:[%s6535_s5] ss:$0 sm:$0xff] }
 0x168   : > { %5048 = vmatprep.subr.bf16.mxu1 %v5242_v28 }
 0x16a   : > { %4825 = vmatmul.mubr.msk.f32.vlgmr.msra.gmra.mrb[2].mxu1 %vm1397_vm1, %v3909_v32 }
 0x16b   : > { %5050 = vmatpush3.bf16.msra.mxu1 %v6053_v41  ;;  %4835 = vmatprep.mubr.msk.f32.mxu1 %vm5243_vm0, %v5244_v36 }
 0x16c   : > { %5051 = vmatprep.subr.bf16.mxu1 %v5242_v28 }
 0x16f   : > { %5053 = vmatpush3.bf16.msra.mxu1 %v6072_v7 }
 0x172   : > { %4836 = vmatmul.mubr.msk.f32.vlgmr.msra.gmra.mrb[2].mxu1 %vm1397_vm1, %v3983_v27  ;;  %vm4061_vm1 = vcmask 126976  }
 0x1e8   : > { %v2099_v49 = vpop.f32.mrb[0].mxu0 }
 0x1e9   : > { %v4540_v47 = vpop.f32.mrb[1].mxu0  ;;  %v5054_v52 = vadd.f32 %v4188_v43, %v2099_v49 }
 0x1eb   : > { %v2105_v9 = vmul.f32 0.1, %v5054_v52  ;;  %vm2104_vm12 = vcmp.gt.f32.partialorder %v5054_v52, 0.0 }
 0x1ed   : > { %v2106_v28 = vsel %vm2104_vm12, %v5054_v52, %v2105_v9 }
 0x1fd   : > { %v2750_v53 = vpop.f32.mrb[0].mxu1 }
 0x1fe   : > { %v5055_v41 = vadd.f32 %v4188_v43, %v2750_v53  ;;  %v4639_v59 = vpop.f32.mrb[1].mxu1 }
 0x200   : > { %vm2755_vm0 = vcmp.gt.f32.partialorder %v5055_v41, 0.0  ;;  %v2756_v36 = vmul.f32 0.1, %v5055_v41 }
 0x202   : > { %v2757_v2 = vsel %vm2755_vm0, %v5055_v41, %v2756_v36 }
 0x203   : > { %v4060_v7 = vmax.f32 %v2106_v28, %v2757_v2 }
 0x205   : > { %v4062_v10 = vsel %vm4061_vm1, %v4060_v7, 0.0 }
 0x206   : > { %v4063_v23 = vrot.slane %v4062_v10, 4 }
 0x208   : > { %v4064_v26 = vadd.f32 %v4063_v23, %v4062_v10 }
 0x20a   : > { %v4065_v5 = vrot.slane %v4064_v26, 2 }
 0x20c   : > { %v4066_v4 = vadd.f32 %v4065_v5, %v4064_v26 }
 0x20e   : > { %v4067_v55 = vrot.slane %v4066_v4, 1 }
 0x210   : > { %v4068_v31 = vadd.f32 %v4067_v55, %v4066_v4 }
 0x230   : > { %v3401_v8 = vpop.f32.mrb[2].mxu0 }
 0x231   : > { %v4738_v39 = vpop.f32.mrb[3].mxu0  ;;  %v5056_v29 = vadd.f32 %v4188_v43, %v3401_v8 }
 0x233   : > { %v3407_v30 = vmul.f32 0.1, %v5056_v29  ;;  %vm3406_vm13 = vcmp.gt.f32.partialorder %v5056_v29, 0.0 }
 0x235   : > { %v3408_v14 = vsel %vm3406_vm13, %v5056_v29, %v3407_v30 }
 0x245   : > { %v4052_v54 = vpop.f32.mrb[2].mxu1 }
 0x246   : > { %v5057_v35 = vadd.f32 %v4188_v43, %v4052_v54  ;;  %v4837_v33 = vpop.f32.mrb[3].mxu1 }
 0x248   : > { %vm4057_vm14 = vcmp.gt.f32.partialorder %v5057_v35, 0.0  ;;  %v4058_v21 = vmul.f32 0.1, %v5057_v35 }
 0x24a   : > { %v4059_v18 = vsel %vm4057_vm14, %v5057_v35, %v4058_v21 }
 0x24b   : > { %v4070_v34 = vmax.f32 %v3408_v14, %v4059_v18 }
 0x24d   : > { %v4071_v58 = vsel %vm4061_vm1, %v4070_v34, 0.0 }
 0x24e   : > { %v4072_v56 = vrot.slane %v4071_v58, 4 }
 0x250   : > { %v4073_v57 = vadd.f32 %v4072_v56, %v4071_v58 }
 0x252   : > { %v4074_v17 = vrot.slane %v4073_v57, 2 }
 0x254   : > { %v4075_v12 = vadd.f32 %v4074_v17, %v4073_v57 }
 0x256   : > { %v4076_v6 = vrot.slane %v4075_v12, 1 }
 0x258   : > { %v4077_v22 = vadd.f32 %v4076_v6, %v4075_v12 }
 0x25a   : > { %v4078_v24 = vadd.f32 %v4077_v22, %v4068_v31 }
 0x25c   : > { %v4079_v46 = vmul.f32 0.1, %v4078_v24 }
 0x25e   : > { %4081 = vst.msk [vmem:[%s258_s13] sm:$0x1] %vm4080_vm15, %v4079_v46 }
 0x25f   : > { %5190 = shalt.err (!%p5187_p3)
}
 0x260   : > { %s5191_s28 = scalar_lea.hbm %s6488_s17, 16  ;;  %s5195_s10 = scalar_lea.hbm %s6536_s6, 32 }
 0x261   : > { %p5192_p4 = scmp.ne.s32.totalorder %s6488_s17, %s5191_s28  ;;  %p5196_p9 = scmp.lt.u32.totalorder %s6488_s17, %s6536_s6 }
 0x262   : > { %p5197_p10 = scmp.lt.u32.totalorder %s5195_s10, %s5191_s28  ;;  %p5199_p12 = scmp.lt.u32.totalorder %s5191_s28, %s6488_s17 }
 0x263   : > { %p5193_p7 = pnand %p5192_p4, %p5319_p5 }
 0x264   : > { %p5198_p11 = por %p5197_p10, %p5196_p9 }
 0x265   : > { %p5194_p8 = pneg %p5193_p7 }
 0x266   : > { %p5200_p13 = por %p5199_p12, %p5198_p11 }
 0x268   : > { %p5201_p0 = pnand %p5200_p13, %p5194_p8 }
 0x26a   : > { %5204 = shalt.err (!%p5201_p0)
}
 0x26b   : > { %5122 = dma.vmem_to_hbm [thread:$0]  (%p5319_p5), %s6490_s14, 16, %s6488_s17, %s4083_s18  }
 0x26c PF: > { %p5128_p1 = scmp.ge.s32.totalorder %s5239_s24, 2  ;;  %s4107_s13 = sand.u32 1, %s5227_s21  }
 0x26d   : > { %s4108_s15 = scalar_lea.sflag [#allocation3], %s4107_s13 }
 0x26e   : > { %p5125_p2 = pnand %p5128_p1, %p5323_p6 }
 0x270   : > { %5222 = dma.done.wait (!%p5125_p2), %s4108_s15, 16  }
 0x271   : > { %5224 = vsyncadd (!%p5125_p2), %s4108_s15, 4294967280  ;;  %p16_p3 = scmp.ge.s32.totalorder %s5306_s27, 4   ;;  %s6539_s21 = smov %s5231_s22 }
 0x272   : > { %s6540_s22 = smov %s5235_s23  ;;  %s6541_s23 = smov %s5317_s30 }
 0x273   : > { %s6542_s24 = smov %s5306_s27  ;;  %18 = sbr.rel (!%p16_p3) target bundleno = 3 (0x3), region = 98 }
 0x27a   :  { %4112 = vsyncpa [#allocation3], 1 }
 0x27b   :  { %4114 = vsyncpa [#allocation3 + $0x1], 1 }

</bundles_post_ra>
